<compile_context>
chip_gen: v7x
topology: tpu7x:2x2x1
jax: 0.10.0
libtpu: 0.0.40
codegen_flags: <defaults>
</compile_context>

<pallas_src>
import functools

import jax
import jax.numpy as jnp
from jax import lax
from jax.experimental import pallas as pl
from jax.experimental.pallas import tpu as pltpu

LN_EPS = 1e-5  # nn.LayerNorm default


def _layernorm(x, g, b):
    mu = jnp.mean(x, axis=-1, keepdims=True)
    var = jnp.mean(jnp.square(x - mu), axis=-1, keepdims=True)
    return (x - mu) * lax.rsqrt(var + LN_EPS) * g + b


def _gelu(x):
    # TODO(synk): PyTorch nn.GELU() default is exact erf-GELU; tanh approximation used here.
    c = jnp.float32(0.7978845608028654)  # sqrt(2/pi)
    return 0.5 * x * (1.0 + jnp.tanh(c * (x + 0.044715 * x * x * x)))


def _gpt_blocks_kernel(n_head,
                       x_ref,
                       w_q_ref, b_q_ref, w_k_ref, b_k_ref, w_v_ref, b_v_ref,
                       w_out_ref, b_out_ref, ln1_g_ref, ln1_b_ref,
                       w_fc_ref, b_fc_ref, w_proj_ref, b_proj_ref,
                       ln2_g_ref, ln2_b_ref,
                       o_ref, act_ref):
    layer = pl.program_id(1)
    n_layers = pl.num_programs(1)

    @pl.when(layer == 0)
    def _():
        act_ref[...] = x_ref[0]            # load this batch element's activation once

    x = act_ref[...]                       # (S, E) float32, resident across layers
    S, E = x.shape
    H = n_head

    x_bf = x.astype(jnp.bfloat16)
    xh = jnp.broadcast_to(x_bf[None], (H, S, E))   # head-batched activations

    # ---- multi-head self attention (nn.MultiheadAttention, dropout=0, no mask) ----
    # Batched over heads: one dot_general per projection; f32 accumulation.
    proj_dims = (((2,), (1,)), ((0,), (0,)))       # contract E, batch over heads
    q = lax.dot_general(xh, w_q_ref[0], proj_dims,
                        preferred_element_type=jnp.float32) + b_q_ref[0]   # (H,S,D)
    k = lax.dot_general(xh, w_k_ref[0], proj_dims,
                        preferred_element_type=jnp.float32) + b_k_ref[0]   # (H,S,D)
    v = lax.dot_general(xh, w_v_ref[0], proj_dims,
                        preferred_element_type=jnp.float32) + b_v_ref[0]   # (H,S,D)

    # q is pre-scaled by 1/sqrt(head_dim) (folded into w_q / b_q at init).
    s = lax.dot_general(q.astype(jnp.bfloat16), k.astype(jnp.bfloat16),
                        (((2,), (2,)), ((0,), (0,))),
                        preferred_element_type=jnp.float32)                # (H,S,S)
    s = s - jnp.max(s, axis=-1, keepdims=True)
    p = jnp.exp(s)
    p = p * pl.reciprocal(jnp.sum(p, axis=-1, keepdims=True), approx=True)  # softmax

    ctx = lax.dot_general(p.astype(jnp.bfloat16), v.astype(jnp.bfloat16),
                          (((2,), (1,)), ((0,), (0,))),
                          preferred_element_type=jnp.float32)              # (H,S,D)

    # Per-head output projection then sum over heads == concat(heads) @ W_out^T.
    per_head = lax.dot_general(ctx.astype(jnp.bfloat16), w_out_ref[0],
                               (((2,), (1,)), ((0,), (0,))),
                               preferred_element_type=jnp.float32)         # (H,S,E)
    attn = jnp.sum(per_head, axis=0) + b_out_ref[0]                        # (S,E)

    # ---- residual + post-LN (ln_1) ----
    x = x + attn
    x = _layernorm(x, ln1_g_ref[0], ln1_b_ref[0])

    # ---- MLP: Linear(E,4E) -> GELU -> Linear(4E,E) -> Dropout(identity) ----
    h1 = jnp.dot(x.astype(jnp.bfloat16), w_fc_ref[0],
                 preferred_element_type=jnp.float32) + b_fc_ref[0]
    h1 = _gelu(h1)
    h2 = jnp.dot(h1.astype(jnp.bfloat16), w_proj_ref[0],
                 preferred_element_type=jnp.float32) + b_proj_ref[0]

    # ---- residual + post-LN (ln_2) ----
    x = x + h2
    x = _layernorm(x, ln2_g_ref[0], ln2_b_ref[0])

    act_ref[...] = x                        # stays resident for the next layer

    @pl.when(layer == n_layers - 1)
    def _():
        o_ref[0] = x.astype(o_ref.dtype)


def _lm_head_kernel(x_ref, g_ref, b_ref, w_ref, o_ref):
    x = _layernorm(x_ref[...], g_ref[...], b_ref[...])                      # ln_f (f32)
    o_ref[...] = jnp.dot(x.astype(jnp.bfloat16), w_ref[...],
                         preferred_element_type=jnp.float32).astype(o_ref.dtype)


def gpt_blocks(x, params, n_head):
    """Runs all transformer blocks in a single fused pallas_call."""
    B, S, E = x.shape
    names = ["w_q", "b_q", "w_k", "b_k", "w_v", "b_v", "w_out", "b_out",
             "ln1_g", "ln1_b", "w_fc", "b_fc", "w_proj", "b_proj",
             "ln2_g", "ln2_b"]
    weights = [params[n] for n in names]
    L = weights[0].shape[0]

    def layer_spec(w):
        shape = (1,) + w.shape[1:]
        nd = len(shape)
        return pl.BlockSpec(shape, lambda b, l, _nd=nd: (l,) + (0,) * (_nd - 1))

    in_specs = ([pl.BlockSpec((1, S, E), lambda b, l: (b, 0, 0))]
                + [layer_spec(w) for w in weights])
    out_specs = pl.BlockSpec((1, S, E), lambda b, l: (b, 0, 0))

    # Scoped-VMEM budget: double-buffered per-layer weight blocks + activations + slack.
    blk_bytes = 3 * S * E * 4 + 2 * sum(
        (w.size // w.shape[0]) * w.dtype.itemsize for w in weights)
    vmem_limit = int(min(64 * 1024 * 1024, max(32 * 1024 * 1024, 4 * blk_bytes)))

    return pl.pallas_call(
        functools.partial(_gpt_blocks_kernel, n_head),
        out_shape=jax.ShapeDtypeStruct((B, S, E), x.dtype),
        grid=(B, L),
        in_specs=in_specs,
        out_specs=out_specs,
        scratch_shapes=[pltpu.VMEM((S, E), jnp.float32)],
        compiler_params=pltpu.CompilerParams(
            dimension_semantics=("parallel", "arbitrary"),
            vmem_limit_bytes=vmem_limit),
    )(x, *weights)


def _pick_tile(n, candidates):
    for c in candidates:
        if n >= c and n % c == 0:
            return c
    return n


def lm_head(x, g, b, w_head):
    B, S, E = x.shape
    V = w_head.shape[1]
    R = B * S
    x2 = x.reshape(R, E)                      # flatten batch into rows
    tR = _pick_tile(R, (512, 256, 128, 64, 32, 16, 8))
    tV = _pick_tile(V, (512, 256, 128))       # lane-dense vocab tile when possible
    out = pl.pallas_call(
        _lm_head_kernel,
        out_shape=jax.ShapeDtypeStruct((R, V), x.dtype),
        grid=(R // tR, V // tV),
        in_specs=[pl.BlockSpec((tR, E), lambda r, v: (r, 0)),
                  pl.BlockSpec((1, E), lambda r, v: (0, 0)),
                  pl.BlockSpec((1, E), lambda r, v: (0, 0)),
                  pl.BlockSpec((E, tV), lambda r, v: (0, v))],
        out_specs=pl.BlockSpec((tR, tV), lambda r, v: (r, v)),
        compiler_params=pltpu.CompilerParams(
            dimension_semantics=("parallel", "parallel"),
            vmem_limit_bytes=32 * 1024 * 1024),
    )(x2, g, b, w_head)
    return out.reshape(B, S, V)


def init_params(key, cfg):
    E, V, P = cfg["n_embd"], cfg["vocab_size"], cfg["n_positions"]
    L, H = cfg["n_layer"], cfg["n_head"]
    D = E // H
    scale = 1.0 / float(D) ** 0.5

    ks = iter(jax.random.split(key, 8 * L + 3))

    def nrm(shape, s=0.02):
        return (s * jax.random.normal(next(ks), shape)).astype(jnp.float32)

    tok_emb = nrm((V, E), 1.0)   # nn.Embedding(vocab_size, n_embd)
    pos_emb = nrm((P, E), 1.0)   # nn.Embedding(n_positions, n_embd)

    lists = {n: [] for n in ["w_q", "b_q", "w_k", "b_k", "w_v", "b_v",
                             "w_out", "b_out", "ln1_g", "ln1_b",
                             "w_fc", "b_fc", "w_proj", "b_proj",
                             "ln2_g", "ln2_b"]}
    for _ in range(L):
        # MHA in_proj (== in_proj_weight^T / in_proj_bias), re-laid out per head as
        # (H, E, D); the 1/sqrt(D) attention scale is folded into the q weight & bias.
        w_in = nrm((E, 3 * E))
        b_in = nrm((1, 3 * E))
        lists["w_q"].append(w_in[:, :E].reshape(E, H, D).transpose(1, 0, 2) * scale)
        lists["w_k"].append(w_in[:, E:2 * E].reshape(E, H, D).transpose(1, 0, 2))
        lists["w_v"].append(w_in[:, 2 * E:].reshape(E, H, D).transpose(1, 0, 2))
        lists["b_q"].append(b_in[0, :E].reshape(H, 1, D) * scale)
        lists["b_k"].append(b_in[0, E:2 * E].reshape(H, 1, D))
        lists["b_v"].append(b_in[0, 2 * E:].reshape(H, 1, D))
        # MHA out_proj.weight^T, split per head as (H, D, E).
        lists["w_out"].append(nrm((E, E)).reshape(H, D, E))
        lists["b_out"].append(nrm((1, E)))
        lists["ln1_g"].append(jnp.ones((1, E), jnp.float32))
        lists["ln1_b"].append(jnp.zeros((1, E), jnp.float32))
        lists["w_fc"].append(nrm((E, 4 * E)))      # mlp[0].weight^T
        lists["b_fc"].append(nrm((1, 4 * E)))
        lists["w_proj"].append(nrm((4 * E, E)))    # mlp[2].weight^T
        lists["b_proj"].append(nrm((1, E)))
        lists["ln2_g"].append(jnp.ones((1, E), jnp.float32))
        lists["ln2_b"].append(jnp.zeros((1, E), jnp.float32))

    bf16_names = {"w_q", "w_k", "w_v", "w_out", "w_fc", "w_proj"}
    params = {"tok_emb": tok_emb, "pos_emb": pos_emb}
    for n, vals in lists.items():
        stacked = jnp.stack(vals)
        params[n] = stacked.astype(jnp.bfloat16) if n in bf16_names else stacked

    params["ln_f_g"] = jnp.ones((1, E), jnp.float32)
    params["ln_f_b"] = jnp.zeros((1, E), jnp.float32)
    params["w_head"] = nrm((E, V)).astype(jnp.bfloat16)   # Linear(E, V, bias=False)^T
    return params


def simple_gpt_forward(params, input_ids, cfg):
    B, S = input_ids.shape
    positions = jnp.arange(S, dtype=jnp.int32)
    # Embedding gathers are glue (not the matmul hot path) -> plain JAX.
    x = params["tok_emb"][input_ids] + params["pos_emb"][positions][None, :, :]
    # self.drop: identity in eval mode.
    x = gpt_blocks(x, params, cfg["n_head"])          # all L blocks, one fused kernel
    return lm_head(x, params["ln_f_g"], params["ln_f_b"], params["w_head"])


if __name__ == "__main__":
    cfg = dict(vocab_size=64, n_positions=16, n_embd=32, n_head=4, n_layer=2,
               embd_pdrop=0.0, attn_pdrop=0.0, resid_pdrop=0.0)
    key = jax.random.PRNGKey(0)
    pkey, dkey = jax.random.split(key)
    params = init_params(pkey, cfg)

    B, S = 2, 8
    input_ids = jax.random.randint(dkey, (B, S), 0, cfg["vocab_size"], dtype=jnp.int32)

    logits = simple_gpt_forward(params, input_ids, cfg)
    logits = jax.block_until_ready(logits)
    assert logits.shape == (B, S, cfg["vocab_size"]), logits.shape
    assert bool(jnp.all(jnp.isfinite(logits)))
    print("KERNEL_OK")
</pallas_src>

<mosaic_0001>
module attributes {stable_mosaic.version = 11 : i64} {
  func.func @_gpt_blocks_kernel(%arg0: i32, %arg1: i32, %arg2: memref<1x8x32xf32, #tpu.memory_space<vmem>>, %arg3: memref<1x4x32x8xbf16, #tpu.memory_space<vmem>>, %arg4: memref<1x4x1x8xf32, #tpu.memory_space<vmem>>, %arg5: memref<1x4x32x8xbf16, #tpu.memory_space<vmem>>, %arg6: memref<1x4x1x8xf32, #tpu.memory_space<vmem>>, %arg7: memref<1x4x32x8xbf16, #tpu.memory_space<vmem>>, %arg8: memref<1x4x1x8xf32, #tpu.memory_space<vmem>>, %arg9: memref<1x4x8x32xbf16, #tpu.memory_space<vmem>>, %arg10: memref<1x1x32xf32, #tpu.memory_space<vmem>>, %arg11: memref<1x1x32xf32, #tpu.memory_space<vmem>>, %arg12: memref<1x1x32xf32, #tpu.memory_space<vmem>>, %arg13: memref<1x32x128xbf16, #tpu.memory_space<vmem>>, %arg14: memref<1x1x128xf32, #tpu.memory_space<vmem>>, %arg15: memref<1x128x32xbf16, #tpu.memory_space<vmem>>, %arg16: memref<1x1x32xf32, #tpu.memory_space<vmem>>, %arg17: memref<1x1x32xf32, #tpu.memory_space<vmem>>, %arg18: memref<1x1x32xf32, #tpu.memory_space<vmem>>, %arg19: memref<1x8x32xf32, #tpu.memory_space<vmem>>, %arg20: memref<8x32xf32, #tpu.memory_space<vmem>>) attributes {dimension_semantics = [#tpu.dimension_semantics<parallel>, #tpu.dimension_semantics<arbitrary>], iteration_bounds = array<i64: 2, 2>, scalar_prefetch = 0 : i64, scratch_operands = 1 : i64, tpu.core_type = #tpu.core_type<tc>, window_params = [{transform_indices = @transform_0, window_bounds = array<i64: 1, 8, 32>}, {transform_indices = @transform_1, window_bounds = array<i64: 1, 4, 32, 8>}, {transform_indices = @transform_2, window_bounds = array<i64: 1, 4, 1, 8>}, {transform_indices = @transform_3, window_bounds = array<i64: 1, 4, 32, 8>}, {transform_indices = @transform_4, window_bounds = array<i64: 1, 4, 1, 8>}, {transform_indices = @transform_5, window_bounds = array<i64: 1, 4, 32, 8>}, {transform_indices = @transform_6, window_bounds = array<i64: 1, 4, 1, 8>}, {transform_indices = @transform_7, window_bounds = array<i64: 1, 4, 8, 32>}, {transform_indices = @transform_8, window_bounds = array<i64: 1, 1, 32>}, {transform_indices = @transform_9, window_bounds = array<i64: 1, 1, 32>}, {transform_indices = @transform_10, window_bounds = array<i64: 1, 1, 32>}, {transform_indices = @transform_11, window_bounds = array<i64: 1, 32, 128>}, {transform_indices = @transform_12, window_bounds = array<i64: 1, 1, 128>}, {transform_indices = @transform_13, window_bounds = array<i64: 1, 128, 32>}, {transform_indices = @transform_14, window_bounds = array<i64: 1, 1, 32>}, {transform_indices = @transform_15, window_bounds = array<i64: 1, 1, 32>}, {transform_indices = @transform_16, window_bounds = array<i64: 1, 1, 32>}, {transform_indices = @transform_17, window_bounds = array<i64: 1, 8, 32>}]} {
    %c0_i32 = arith.constant 0 : i32
    %0 = arith.cmpi eq, %arg1, %c0_i32 : i32
    %1 = arith.extui %0 : i1 to i32
    %c0_i32_0 = arith.constant 0 : i32
    %2 = arith.cmpi ne, %1, %c0_i32_0 : i32
    scf.if %2 {
      %c0_84 = arith.constant 0 : index
      %c0_85 = arith.constant 0 : index
      %c0_86 = arith.constant 0 : index
      %141 = vector.load %arg2[%c0_84, %c0_85, %c0_86] : memref<1x8x32xf32, #tpu.memory_space<vmem>>, vector<1x8x32xf32>
      %142 = vector.shape_cast %141 : vector<1x8x32xf32> to vector<8x32xf32>
      %c0_87 = arith.constant 0 : index
      %c0_88 = arith.constant 0 : index
      %143 = vector.load %arg20[%c0_87, %c0_88] : memref<8x32xf32, #tpu.memory_space<vmem>>, vector<8x32xf32>
      tpu.vector_store %arg20[%c0_87, %c0_88], %142 {strides = array<i32>} : memref<8x32xf32, #tpu.memory_space<vmem>>, vector<8x32xf32>,
    } else {
    }
    %c0 = arith.constant 0 : index
    %c0_1 = arith.constant 0 : index
    %3 = vector.load %arg20[%c0, %c0_1] : memref<8x32xf32, #tpu.memory_space<vmem>>, vector<8x32xf32>
    %4 = arith.truncf %3 : vector<8x32xf32> to vector<8x32xbf16>
    %5 = vector.shape_cast %4 : vector<8x32xbf16> to vector<1x8x32xbf16>
    %6 = vector.shape_cast %5 : vector<1x8x32xbf16> to vector<1x8x32xbf16>
    %7 = vector.broadcast %6 : vector<1x8x32xbf16> to vector<4x8x32xbf16>
    %c0_2 = arith.constant 0 : index
    %c0_3 = arith.constant 0 : index
    %c0_4 = arith.constant 0 : index
    %c0_5 = arith.constant 0 : index
    %8 = vector.load %arg3[%c0_2, %c0_3, %c0_4, %c0_5] : memref<1x4x32x8xbf16, #tpu.memory_space<vmem>>, vector<1x4x32x8xbf16>
    %9 = vector.shape_cast %8 : vector<1x4x32x8xbf16> to vector<4x32x8xbf16>
    %cst = arith.constant dense<0.000000e+00> : vector<4x8x8xf32>
    %10 = tpu.matmul %7, %9, %cst {dimension_numbers = #tpu.dot_dimension_numbers<[2], [1], [1], [2], [0, 0, 0, 1, 1, 2], [0], [0]>} : vector<4x8x32xbf16>, vector<4x32x8xbf16>, vector<4x8x8xf32> -> vector<4x8x8xf32>
    %c0_6 = arith.constant 0 : index
    %c0_7 = arith.constant 0 : index
    %c0_8 = arith.constant 0 : index
    %c0_9 = arith.constant 0 : index
    %11 = vector.load %arg4[%c0_6, %c0_7, %c0_8, %c0_9] : memref<1x4x1x8xf32, #tpu.memory_space<vmem>>, vector<1x4x1x8xf32>
    %12 = vector.shape_cast %11 : vector<1x4x1x8xf32> to vector<4x1x8xf32>
    %13 = vector.broadcast %12 : vector<4x1x8xf32> to vector<4x8x8xf32>
    %14 = arith.addf %10, %13 : vector<4x8x8xf32>
    %c0_10 = arith.constant 0 : index
    %c0_11 = arith.constant 0 : index
    %c0_12 = arith.constant 0 : index
    %c0_13 = arith.constant 0 : index
    %15 = vector.load %arg5[%c0_10, %c0_11, %c0_12, %c0_13] : memref<1x4x32x8xbf16, #tpu.memory_space<vmem>>, vector<1x4x32x8xbf16>
    %16 = vector.shape_cast %15 : vector<1x4x32x8xbf16> to vector<4x32x8xbf16>
    %cst_14 = arith.constant dense<0.000000e+00> : vector<4x8x8xf32>
    %17 = tpu.matmul %7, %16, %cst_14 {dimension_numbers = #tpu.dot_dimension_numbers<[2], [1], [1], [2], [0, 0, 0, 1, 1, 2], [0], [0]>} : vector<4x8x32xbf16>, vector<4x32x8xbf16>, vector<4x8x8xf32> -> vector<4x8x8xf32>
    %c0_15 = arith.constant 0 : index
    %c0_16 = arith.constant 0 : index
    %c0_17 = arith.constant 0 : index
    %c0_18 = arith.constant 0 : index
    %18 = vector.load %arg6[%c0_15, %c0_16, %c0_17, %c0_18] : memref<1x4x1x8xf32, #tpu.memory_space<vmem>>, vector<1x4x1x8xf32>
    %19 = vector.shape_cast %18 : vector<1x4x1x8xf32> to vector<4x1x8xf32>
    %20 = vector.broadcast %19 : vector<4x1x8xf32> to vector<4x8x8xf32>
    %21 = arith.addf %17, %20 : vector<4x8x8xf32>
    %c0_19 = arith.constant 0 : index
    %c0_20 = arith.constant 0 : index
    %c0_21 = arith.constant 0 : index
    %c0_22 = arith.constant 0 : index
    %22 = vector.load %arg7[%c0_19, %c0_20, %c0_21, %c0_22] : memref<1x4x32x8xbf16, #tpu.memory_space<vmem>>, vector<1x4x32x8xbf16>
    %23 = vector.shape_cast %22 : vector<1x4x32x8xbf16> to vector<4x32x8xbf16>
    %cst_23 = arith.constant dense<0.000000e+00> : vector<4x8x8xf32>
    %24 = tpu.matmul %7, %23, %cst_23 {dimension_numbers = #tpu.dot_dimension_numbers<[2], [1], [1], [2], [0, 0, 0, 1, 1, 2], [0], [0]>} : vector<4x8x32xbf16>, vector<4x32x8xbf16>, vector<4x8x8xf32> -> vector<4x8x8xf32>
    %c0_24 = arith.constant 0 : index
    %c0_25 = arith.constant 0 : index
    %c0_26 = arith.constant 0 : index
    %c0_27 = arith.constant 0 : index
    %25 = vector.load %arg8[%c0_24, %c0_25, %c0_26, %c0_27] : memref<1x4x1x8xf32, #tpu.memory_space<vmem>>, vector<1x4x1x8xf32>
    %26 = vector.shape_cast %25 : vector<1x4x1x8xf32> to vector<4x1x8xf32>
    %27 = vector.broadcast %26 : vector<4x1x8xf32> to vector<4x8x8xf32>
    %28 = arith.addf %24, %27 : vector<4x8x8xf32>
    %29 = arith.truncf %14 : vector<4x8x8xf32> to vector<4x8x8xbf16>
    %30 = arith.truncf %21 : vector<4x8x8xf32> to vector<4x8x8xbf16>
    %cst_28 = arith.constant dense<0.000000e+00> : vector<4x8x8xf32>
    %31 = tpu.matmul %29, %30, %cst_28 {dimension_numbers = #tpu.dot_dimension_numbers<[2], [2], [1], [1], [0, 0, 0, 1, 1, 1], [0], [0]>} : vector<4x8x8xbf16>, vector<4x8x8xbf16>, vector<4x8x8xf32> -> vector<4x8x8xf32>
    %cst_29 = arith.constant dense<0xFF800000> : vector<4x8xf32>
    %32 = vector.multi_reduction <maximumf>, %31, %cst_29 [2] : vector<4x8x8xf32> to vector<4x8xf32>
    %33 = vector.shape_cast %32 : vector<4x8xf32> to vector<4x8x1xf32>
    %34 = vector.broadcast %33 : vector<4x8x1xf32> to vector<4x8x8xf32>
    %35 = arith.subf %31, %34 : vector<4x8x8xf32>
    %36 = math.exp %35 : vector<4x8x8xf32>
    %cst_30 = arith.constant dense<0.000000e+00> : vector<4x8xf32>
    %37 = vector.multi_reduction <add>, %36, %cst_30 [2] : vector<4x8x8xf32> to vector<4x8xf32>
    %38 = vector.shape_cast %37 : vector<4x8xf32> to vector<4x8x1xf32>
    %39 = tpu.reciprocal %38 {approx = true} : vector<4x8x1xf32> -> vector<4x8x1xf32>
    %40 = vector.broadcast %39 : vector<4x8x1xf32> to vector<4x8x8xf32>
    %41 = arith.mulf %36, %40 : vector<4x8x8xf32>
    %42 = arith.truncf %41 : vector<4x8x8xf32> to vector<4x8x8xbf16>
    %43 = arith.truncf %28 : vector<4x8x8xf32> to vector<4x8x8xbf16>
    %cst_31 = arith.constant dense<0.000000e+00> : vector<4x8x8xf32>
    %44 = tpu.matmul %42, %43, %cst_31 {dimension_numbers = #tpu.dot_dimension_numbers<[2], [1], [1], [2], [0, 0, 0, 1, 1, 2], [0], [0]>} : vector<4x8x8xbf16>, vector<4x8x8xbf16>, vector<4x8x8xf32> -> vector<4x8x8xf32>
    %45 = arith.truncf %44 : vector<4x8x8xf32> to vector<4x8x8xbf16>
    %c0_32 = arith.constant 0 : index
    %c0_33 = arith.constant 0 : index
    %c0_34 = arith.constant 0 : index
    %c0_35 = arith.constant 0 : index
    %46 = vector.load %arg9[%c0_32, %c0_33, %c0_34, %c0_35] : memref<1x4x8x32xbf16, #tpu.memory_space<vmem>>, vector<1x4x8x32xbf16>
    %47 = vector.shape_cast %46 : vector<1x4x8x32xbf16> to vector<4x8x32xbf16>
    %cst_36 = arith.constant dense<0.000000e+00> : vector<4x8x32xf32>
    %48 = tpu.matmul %45, %47, %cst_36 {dimension_numbers = #tpu.dot_dimension_numbers<[2], [1], [1], [2], [0, 0, 0, 1, 1, 2], [0], [0]>} : vector<4x8x8xbf16>, vector<4x8x32xbf16>, vector<4x8x32xf32> -> vector<4x8x32xf32>
    %cst_37 = arith.constant dense<0.000000e+00> : vector<8x32xf32>
    %49 = vector.multi_reduction <add>, %48, %cst_37 [0] : vector<4x8x32xf32> to vector<8x32xf32>
    %c0_38 = arith.constant 0 : index
    %c0_39 = arith.constant 0 : index
    %c0_40 = arith.constant 0 : index
    %50 = vector.load %arg10[%c0_38, %c0_39, %c0_40] : memref<1x1x32xf32, #tpu.memory_space<vmem>>, vector<1x1x32xf32>
    %51 = vector.shape_cast %50 : vector<1x1x32xf32> to vector<1x32xf32>
    %52 = vector.broadcast %51 : vector<1x32xf32> to vector<8x32xf32>
    %53 = arith.addf %49, %52 : vector<8x32xf32>
    %54 = arith.addf %3, %53 : vector<8x32xf32>
    %c0_41 = arith.constant 0 : index
    %c0_42 = arith.constant 0 : index
    %c0_43 = arith.constant 0 : index
    %55 = vector.load %arg11[%c0_41, %c0_42, %c0_43] : memref<1x1x32xf32, #tpu.memory_space<vmem>>, vector<1x1x32xf32>
    %56 = vector.shape_cast %55 : vector<1x1x32xf32> to vector<1x32xf32>
    %c0_44 = arith.constant 0 : index
    %c0_45 = arith.constant 0 : index
    %c0_46 = arith.constant 0 : index
    %57 = vector.load %arg12[%c0_44, %c0_45, %c0_46] : memref<1x1x32xf32, #tpu.memory_space<vmem>>, vector<1x1x32xf32>
    %58 = vector.shape_cast %57 : vector<1x1x32xf32> to vector<1x32xf32>
    %cst_47 = arith.constant dense<0.000000e+00> : vector<8xf32>
    %59 = vector.multi_reduction <add>, %54, %cst_47 [1] : vector<8x32xf32> to vector<8xf32>
    %60 = vector.shape_cast %59 : vector<8xf32> to vector<8x1xf32>
    %cst_48 = arith.constant 3.200000e+01 : f32
    %61 = vector.broadcast %cst_48 : f32 to vector<8x1xf32>
    %62 = arith.divf %60, %61 : vector<8x1xf32>
    %63 = vector.broadcast %62 : vector<8x1xf32> to vector<8x32xf32>
    %64 = arith.subf %54, %63 : vector<8x32xf32>
    %65 = arith.mulf %64, %64 : vector<8x32xf32>
    %cst_49 = arith.constant dense<0.000000e+00> : vector<8xf32>
    %66 = vector.multi_reduction <add>, %65, %cst_49 [1] : vector<8x32xf32> to vector<8xf32>
    %67 = vector.shape_cast %66 : vector<8xf32> to vector<8x1xf32>
    %cst_50 = arith.constant 3.200000e+01 : f32
    %68 = vector.broadcast %cst_50 : f32 to vector<8x1xf32>
    %69 = arith.divf %67, %68 : vector<8x1xf32>
    %70 = vector.broadcast %62 : vector<8x1xf32> to vector<8x32xf32>
    %71 = arith.subf %54, %70 : vector<8x32xf32>
    %cst_51 = arith.constant 9.99999974E-6 : f32
    %72 = vector.broadcast %cst_51 : f32 to vector<8x1xf32>
    %73 = arith.addf %69, %72 : vector<8x1xf32>
    %74 = math.rsqrt %73 : vector<8x1xf32>
    %75 = vector.broadcast %74 : vector<8x1xf32> to vector<8x32xf32>
    %76 = arith.mulf %71, %75 : vector<8x32xf32>
    %77 = vector.broadcast %56 : vector<1x32xf32> to vector<8x32xf32>
    %78 = arith.mulf %76, %77 : vector<8x32xf32>
    %79 = vector.broadcast %58 : vector<1x32xf32> to vector<8x32xf32>
    %80 = arith.addf %78, %79 : vector<8x32xf32>
    %81 = arith.truncf %80 : vector<8x32xf32> to vector<8x32xbf16>
    %c0_52 = arith.constant 0 : index
    %c0_53 = arith.constant 0 : index
    %c0_54 = arith.constant 0 : index
    %82 = vector.load %arg13[%c0_52, %c0_53, %c0_54] : memref<1x32x128xbf16, #tpu.memory_space<vmem>>, vector<1x32x128xbf16>
    %83 = vector.shape_cast %82 : vector<1x32x128xbf16> to vector<32x128xbf16>
    %cst_55 = arith.constant dense<0.000000e+00> : vector<8x128xf32>
    %84 = tpu.matmul %81, %83, %cst_55 {dimension_numbers = #tpu.dot_dimension_numbers<[1], [0], [0], [1], [0, 0, 1, 1], [], []>} : vector<8x32xbf16>, vector<32x128xbf16>, vector<8x128xf32> -> vector<8x128xf32>
    %c0_56 = arith.constant 0 : index
    %c0_57 = arith.constant 0 : index
    %c0_58 = arith.constant 0 : index
    %85 = vector.load %arg14[%c0_56, %c0_57, %c0_58] : memref<1x1x128xf32, #tpu.memory_space<vmem>>, vector<1x1x128xf32>
    %86 = vector.shape_cast %85 : vector<1x1x128xf32> to vector<1x128xf32>
    %87 = vector.broadcast %86 : vector<1x128xf32> to vector<8x128xf32>
    %88 = arith.addf %84, %87 : vector<8x128xf32>
    %cst_59 = arith.constant 5.000000e-01 : f32
    %89 = vector.broadcast %cst_59 : f32 to vector<8x128xf32>
    %90 = arith.mulf %89, %88 : vector<8x128xf32>
    %cst_60 = arith.constant 4.471500e-02 : f32
    %91 = vector.broadcast %cst_60 : f32 to vector<8x128xf32>
    %92 = arith.mulf %91, %88 : vector<8x128xf32>
    %93 = arith.mulf %92, %88 : vector<8x128xf32>
    %94 = arith.mulf %93, %88 : vector<8x128xf32>
    %95 = arith.addf %88, %94 : vector<8x128xf32>
    %cst_61 = arith.constant 0.797884583 : f32
    %96 = vector.broadcast %cst_61 : f32 to vector<8x128xf32>
    %97 = arith.mulf %96, %95 : vector<8x128xf32>
    %98 = math.tanh %97 : vector<8x128xf32>
    %cst_62 = arith.constant 1.000000e+00 : f32
    %99 = vector.broadcast %cst_62 : f32 to vector<8x128xf32>
    %100 = arith.addf %99, %98 : vector<8x128xf32>
    %101 = arith.mulf %90, %100 : vector<8x128xf32>
    %102 = arith.truncf %101 : vector<8x128xf32> to vector<8x128xbf16>
    %c0_63 = arith.constant 0 : index
    %c0_64 = arith.constant 0 : index
    %c0_65 = arith.constant 0 : index
    %103 = vector.load %arg15[%c0_63, %c0_64, %c0_65] : memref<1x128x32xbf16, #tpu.memory_space<vmem>>, vector<1x128x32xbf16>
    %104 = vector.shape_cast %103 : vector<1x128x32xbf16> to vector<128x32xbf16>
    %cst_66 = arith.constant dense<0.000000e+00> : vector<8x32xf32>
    %105 = tpu.matmul %102, %104, %cst_66 {dimension_numbers = #tpu.dot_dimension_numbers<[1], [0], [0], [1], [0, 0, 1, 1], [], []>} : vector<8x128xbf16>, vector<128x32xbf16>, vector<8x32xf32> -> vector<8x32xf32>
    %c0_67 = arith.constant 0 : index
    %c0_68 = arith.constant 0 : index
    %c0_69 = arith.constant 0 : index
    %106 = vector.load %arg16[%c0_67, %c0_68, %c0_69] : memref<1x1x32xf32, #tpu.memory_space<vmem>>, vector<1x1x32xf32>
    %107 = vector.shape_cast %106 : vector<1x1x32xf32> to vector<1x32xf32>
    %108 = vector.broadcast %107 : vector<1x32xf32> to vector<8x32xf32>
    %109 = arith.addf %105, %108 : vector<8x32xf32>
    %110 = arith.addf %80, %109 : vector<8x32xf32>
    %c0_70 = arith.constant 0 : index
    %c0_71 = arith.constant 0 : index
    %c0_72 = arith.constant 0 : index
    %111 = vector.load %arg17[%c0_70, %c0_71, %c0_72] : memref<1x1x32xf32, #tpu.memory_space<vmem>>, vector<1x1x32xf32>
    %112 = vector.shape_cast %111 : vector<1x1x32xf32> to vector<1x32xf32>
    %c0_73 = arith.constant 0 : index
    %c0_74 = arith.constant 0 : index
    %c0_75 = arith.constant 0 : index
    %113 = vector.load %arg18[%c0_73, %c0_74, %c0_75] : memref<1x1x32xf32, #tpu.memory_space<vmem>>, vector<1x1x32xf32>
    %114 = vector.shape_cast %113 : vector<1x1x32xf32> to vector<1x32xf32>
    %cst_76 = arith.constant dense<0.000000e+00> : vector<8xf32>
    %115 = vector.multi_reduction <add>, %110, %cst_76 [1] : vector<8x32xf32> to vector<8xf32>
    %116 = vector.shape_cast %115 : vector<8xf32> to vector<8x1xf32>
    %cst_77 = arith.constant 3.200000e+01 : f32
    %117 = vector.broadcast %cst_77 : f32 to vector<8x1xf32>
    %118 = arith.divf %116, %117 : vector<8x1xf32>
    %119 = vector.broadcast %118 : vector<8x1xf32> to vector<8x32xf32>
    %120 = arith.subf %110, %119 : vector<8x32xf32>
    %121 = arith.mulf %120, %120 : vector<8x32xf32>
    %cst_78 = arith.constant dense<0.000000e+00> : vector<8xf32>
    %122 = vector.multi_reduction <add>, %121, %cst_78 [1] : vector<8x32xf32> to vector<8xf32>
    %123 = vector.shape_cast %122 : vector<8xf32> to vector<8x1xf32>
    %cst_79 = arith.constant 3.200000e+01 : f32
    %124 = vector.broadcast %cst_79 : f32 to vector<8x1xf32>
    %125 = arith.divf %123, %124 : vector<8x1xf32>
    %126 = vector.broadcast %118 : vector<8x1xf32> to vector<8x32xf32>
    %127 = arith.subf %110, %126 : vector<8x32xf32>
    %cst_80 = arith.constant 9.99999974E-6 : f32
    %128 = vector.broadcast %cst_80 : f32 to vector<8x1xf32>
    %129 = arith.addf %125, %128 : vector<8x1xf32>
    %130 = math.rsqrt %129 : vector<8x1xf32>
    %131 = vector.broadcast %130 : vector<8x1xf32> to vector<8x32xf32>
    %132 = arith.mulf %127, %131 : vector<8x32xf32>
    %133 = vector.broadcast %112 : vector<1x32xf32> to vector<8x32xf32>
    %134 = arith.mulf %132, %133 : vector<8x32xf32>
    %135 = vector.broadcast %114 : vector<1x32xf32> to vector<8x32xf32>
    %136 = arith.addf %134, %135 : vector<8x32xf32>
    %c0_81 = arith.constant 0 : index
    %c0_82 = arith.constant 0 : index
    %137 = vector.load %arg20[%c0_81, %c0_82] : memref<8x32xf32, #tpu.memory_space<vmem>>, vector<8x32xf32>
    tpu.vector_store %arg20[%c0_81, %c0_82], %136 {strides = array<i32>} : memref<8x32xf32, #tpu.memory_space<vmem>>, vector<8x32xf32>,
    %c1_i32 = arith.constant 1 : i32
    %138 = arith.cmpi eq, %arg1, %c1_i32 : i32
    %139 = arith.extui %138 : i1 to i32
    %c0_i32_83 = arith.constant 0 : i32
    %140 = arith.cmpi ne, %139, %c0_i32_83 : i32
    scf.if %140 {
      %c0_84 = arith.constant 0 : index
      %c0_85 = arith.constant 0 : index
      %c0_86 = arith.constant 0 : index
      %141 = vector.load %arg19[%c0_84, %c0_85, %c0_86] : memref<1x8x32xf32, #tpu.memory_space<vmem>>, vector<1x8x32xf32>
      %142 = vector.shape_cast %141 : vector<1x8x32xf32> to vector<8x32xf32>
      %143 = vector.shape_cast %136 : vector<8x32xf32> to vector<1x8x32xf32>
      tpu.vector_store %arg19[%c0_84, %c0_85, %c0_86], %143 {strides = array<i32>} : memref<1x8x32xf32, #tpu.memory_space<vmem>>, vector<1x8x32xf32>,
    } else {
    }
    return
  }
  func.func @transform_0(%arg0: i32, %arg1: i32) -> (i32, i32, i32) {
    %c0_i32 = arith.constant 0 : i32
    %c0_i32_0 = arith.constant 0 : i32
    %c0_i32_1 = arith.constant 0 : i32
    return %arg0, %c0_i32, %c0_i32_0 : i32, i32, i32
  }
  func.func @transform_1(%arg0: i32, %arg1: i32) -> (i32, i32, i32, i32) {
    %c0_i32 = arith.constant 0 : i32
    %c0_i32_0 = arith.constant 0 : i32
    %c0_i32_1 = arith.constant 0 : i32
    %c0_i32_2 = arith.constant 0 : i32
    return %arg1, %c0_i32, %c0_i32_0, %c0_i32_1 : i32, i32, i32, i32
  }
  func.func @transform_2(%arg0: i32, %arg1: i32) -> (i32, i32, i32, i32) {
    %c0_i32 = arith.constant 0 : i32
    %c0_i32_0 = arith.constant 0 : i32
    %c0_i32_1 = arith.constant 0 : i32
    %c0_i32_2 = arith.constant 0 : i32
    return %arg1, %c0_i32, %c0_i32_0, %c0_i32_1 : i32, i32, i32, i32
  }
  func.func @transform_3(%arg0: i32, %arg1: i32) -> (i32, i32, i32, i32) {
    %c0_i32 = arith.constant 0 : i32
    %c0_i32_0 = arith.constant 0 : i32
    %c0_i32_1 = arith.constant 0 : i32
    %c0_i32_2 = arith.constant 0 : i32
    return %arg1, %c0_i32, %c0_i32_0, %c0_i32_1 : i32, i32, i32, i32
  }
  func.func @transform_4(%arg0: i32, %arg1: i32) -> (i32, i32, i32, i32) {
    %c0_i32 = arith.constant 0 : i32
    %c0_i32_0 = arith.constant 0 : i32
    %c0_i32_1 = arith.constant 0 : i32
    %c0_i32_2 = arith.constant 0 : i32
    return %arg1, %c0_i32, %c0_i32_0, %c0_i32_1 : i32, i32, i32, i32
  }
  func.func @transform_5(%arg0: i32, %arg1: i32) -> (i32, i32, i32, i32) {
    %c0_i32 = arith.constant 0 : i32
    %c0_i32_0 = arith.constant 0 : i32
    %c0_i32_1 = arith.constant 0 : i32
    %c0_i32_2 = arith.constant 0 : i32
    return %arg1, %c0_i32, %c0_i32_0, %c0_i32_1 : i32, i32, i32, i32
  }
  func.func @transform_6(%arg0: i32, %arg1: i32) -> (i32, i32, i32, i32) {
    %c0_i32 = arith.constant 0 : i32
    %c0_i32_0 = arith.constant 0 : i32
    %c0_i32_1 = arith.constant 0 : i32
    %c0_i32_2 = arith.constant 0 : i32
    return %arg1, %c0_i32, %c0_i32_0, %c0_i32_1 : i32, i32, i32, i32
  }
  func.func @transform_7(%arg0: i32, %arg1: i32) -> (i32, i32, i32, i32) {
    %c0_i32 = arith.constant 0 : i32
    %c0_i32_0 = arith.constant 0 : i32
    %c0_i32_1 = arith.constant 0 : i32
    %c0_i32_2 = arith.constant 0 : i32
    return %arg1, %c0_i32, %c0_i32_0, %c0_i32_1 : i32, i32, i32, i32
  }
  func.func @transform_8(%arg0: i32, %arg1: i32) -> (i32, i32, i32) {
    %c0_i32 = arith.constant 0 : i32
    %c0_i32_0 = arith.constant 0 : i32
    %c0_i32_1 = arith.constant 0 : i32
    return %arg1, %c0_i32, %c0_i32_0 : i32, i32, i32
  }
  func.func @transform_9(%arg0: i32, %arg1: i32) -> (i32, i32, i32) {
    %c0_i32 = arith.constant 0 : i32
    %c0_i32_0 = arith.constant 0 : i32
    %c0_i32_1 = arith.constant 0 : i32
    return %arg1, %c0_i32, %c0_i32_0 : i32, i32, i32
  }
  func.func @transform_10(%arg0: i32, %arg1: i32) -> (i32, i32, i32) {
    %c0_i32 = arith.constant 0 : i32
    %c0_i32_0 = arith.constant 0 : i32
    %c0_i32_1 = arith.constant 0 : i32
    return %arg1, %c0_i32, %c0_i32_0 : i32, i32, i32
  }
  func.func @transform_11(%arg0: i32, %arg1: i32) -> (i32, i32, i32) {
    %c0_i32 = arith.constant 0 : i32
    %c0_i32_0 = arith.constant 0 : i32
    %c0_i32_1 = arith.constant 0 : i32
    return %arg1, %c0_i32, %c0_i32_0 : i32, i32, i32
  }
  func.func @transform_12(%arg0: i32, %arg1: i32) -> (i32, i32, i32) {
    %c0_i32 = arith.constant 0 : i32
    %c0_i32_0 = arith.constant 0 : i32
    %c0_i32_1 = arith.constant 0 : i32
    return %arg1, %c0_i32, %c0_i32_0 : i32, i32, i32
  }
  func.func @transform_13(%arg0: i32, %arg1: i32) -> (i32, i32, i32) {
    %c0_i32 = arith.constant 0 : i32
    %c0_i32_0 = arith.constant 0 : i32
    %c0_i32_1 = arith.constant 0 : i32
    return %arg1, %c0_i32, %c0_i32_0 : i32, i32, i32
  }
  func.func @transform_14(%arg0: i32, %arg1: i32) -> (i32, i32, i32) {
    %c0_i32 = arith.constant 0 : i32
    %c0_i32_0 = arith.constant 0 : i32
    %c0_i32_1 = arith.constant 0 : i32
    return %arg1, %c0_i32, %c0_i32_0 : i32, i32, i32
  }
  func.func @transform_15(%arg0: i32, %arg1: i32) -> (i32, i32, i32) {
    %c0_i32 = arith.constant 0 : i32
    %c0_i32_0 = arith.constant 0 : i32
    %c0_i32_1 = arith.constant 0 : i32
    return %arg1, %c0_i32, %c0_i32_0 : i32, i32, i32
  }
  func.func @transform_16(%arg0: i32, %arg1: i32) -> (i32, i32, i32) {
    %c0_i32 = arith.constant 0 : i32
    %c0_i32_0 = arith.constant 0 : i32
    %c0_i32_1 = arith.constant 0 : i32
    return %arg1, %c0_i32, %c0_i32_0 : i32, i32, i32
  }
  func.func @transform_17(%arg0: i32, %arg1: i32) -> (i32, i32, i32) {
    %c0_i32 = arith.constant 0 : i32
    %c0_i32_0 = arith.constant 0 : i32
    %c0_i32_1 = arith.constant 0 : i32
    return %arg0, %c0_i32, %c0_i32_0 : i32, i32, i32
  }
}

</mosaic_0001>

<bundles_post_ra>
// kernel: tpu_custom_call.1
= control target key start
LH: loop header
LB: loop body
LE: loop exit
PB: predicated region body
PF: predicated region fallthrough
CT: control target
= control target key end

     0   :  { %s3922_s0 = inlined_call_operand.vmem [shape: f32[2,8,32], index: 0, kind: input, shape index: {}]   ;;  %s3923_s1 = inlined_call_operand.vmem [shape: bf16[2,4,32,8], index: 1, kind: input, shape index: {}]   ;;  %s3924_s2 = inlined_call_operand.vmem [shape: f32[2,4,1,8], index: 2, kind: input, shape index: {}]   ;;  %s3925_s3 = inlined_call_operand.vmem [shape: bf16[2,4,32,8], index: 3, kind: input, shape index: {}]   ;;  %s3926_s4 = inlined_call_operand.vmem [shape: f32[2,4,1,8], index: 4, kind: input, shape index: {}]   ;;  %s3927_s5 = inlined_call_operand.vmem [shape: bf16[2,4,32,8], index: 5, kind: input, shape index: {}]   ;;  %s3928_s6 = inlined_call_operand.vmem [shape: f32[2,4,1,8], index: 6, kind: input, shape index: {}]   ;;  %s3929_s7 = inlined_call_operand.vmem [shape: bf16[2,4,8,32], index: 7, kind: input, shape index: {}]   ;;  %s3930_s8 = inlined_call_operand.vmem [shape: f32[2,1,32], index: 8, kind: input, shape index: {}]   ;;  %s3931_s9 = inlined_call_operand.vmem [shape: f32[2,1,32], index: 9, kind: input, shape index: {}]   ;;  %s3932_s10 = inlined_call_operand.vmem [shape: f32[2,1,32], index: 10, kind: input, shape index: {}]   ;;  %s3933_s11 = inlined_call_operand.vmem [shape: bf16[2,32,128], index: 11, kind: input, shape index: {}]   ;;  %s3934_s12 = inlined_call_operand.vmem [shape: f32[2,1,128], index: 12, kind: input, shape index: {}]   ;;  %s3935_s13 = inlined_call_operand.vmem [shape: bf16[2,128,32], index: 13, kind: input, shape index: {}]   ;;  %s3936_s14 = inlined_call_operand.vmem [shape: f32[2,1,32], index: 14, kind: input, shape index: {}]   ;;  %s3937_s15 = inlined_call_operand.vmem [shape: f32[2,1,32], index: 15, kind: input, shape index: {}]   ;;  %s3938_s16 = inlined_call_operand.vmem [shape: f32[2,1,32], index: 16, kind: input, shape index: {}]   ;;  %s3939_s17 = inlined_call_operand.hbm [shape: f32[2,8,32], index: 17, kind: output, shape index: {}]  }
   0x1   :  { %3959 = sst [smem:[#allocation23_spill]] %s3922_s0 }
   0x2   :  { %3960 = sst [smem:[#allocation24_spill]] %s3923_s1 }
   0x3   :  { %3961 = sst [smem:[#allocation25_spill]] %s3924_s2 }
   0x4   :  { %3962 = sst [smem:[#allocation26_spill]] %s3925_s3 }
   0x5   :  { %3963 = sst [smem:[#allocation27_spill]] %s3926_s4 }
   0x6   :  { %3964 = sst [smem:[#allocation28_spill]] %s3927_s5 }
   0x7   :  { %3965 = sst [smem:[#allocation29_spill]] %s3928_s6 }
   0x8   :  { %3966 = sst [smem:[#allocation30_spill]] %s3929_s7 }
   0x9   :  { %3967 = sst [smem:[#allocation31_spill]] %s3932_s10 }
   0xa   :  { %3968 = sst [smem:[#allocation32_spill]] %s3933_s11 }
   0xb   :  { %3969 = sst [smem:[#allocation33_spill]] %s3937_s15 }
   0xc   :  { %3970 = sst [smem:[#allocation34_spill]] %s3938_s16 }
   0xd   :  { %3971 = sst [smem:[#allocation35_spill]] %s3939_s17 }
   0xe   :  { %22 = vsyncpa [#allocation4], 0 }
   0xf   :  { %24 = vsyncpa [#allocation4 + $0x1], 0  ;;  %s3440_s24 = smov 0   ;;  %s3442_s25 = smov 0  }
  0x10   :  { %s3444_s26 = smov 0   ;;  %s3446_s27 = smov 0  }
  0x11   :  { %s3448_s28 = smov 0   ;;  %s3450_s29 = smov 0  }
  0x12   :  { %s3452_s0 = smov 0   ;;  %s3454_s30 = smov 0  }
  0x13 LB: > { %3972 = sst [smem:[#allocation6_spill]] %s3317_s24  ;;  %s2742_s18 = sadd.s32 4294967295, %s3345_s30   ;;  %s3345_s30 = sphi %s3454_s30, %s30_s30   ;;  %s3341_s0 = sphi %s3452_s0, %s4029_s0   ;;  %s3337_s29 = sphi %s3450_s29, %s4028_s29   ;;  %s3333_s28 = sphi %s3448_s28, %s4027_s28   ;;  %s3329_s27 = sphi %s3446_s27, %s4026_s27   ;;  %s3325_s26 = sphi %s3444_s26, %s4025_s26   ;;  %s3321_s25 = sphi %s3442_s25, %s4024_s25   ;;  %s3317_s24 = sphi %s3440_s24, %s4023_s24  }
  0x14   : > { %3973 = sst [smem:[#allocation7_spill]] %s3321_s25  ;;  %s2743_s19 = sadd.s32 4294967294, %s3345_s30  }
  0x15   : > { %3974 = sst [smem:[#allocation8_spill]] %s3325_s26  ;;  %s39_s1 = sadd.s32 1, %s3337_s29 }
  0x16   : > { %3975 = sst [smem:[#allocation9_spill]] %s3329_s27  ;;  %p40_p0 = scmp.ge.s32.totalorder %s39_s1, 2 }
  0x17   : > { %3976 = sst [smem:[#allocation10_spill]] %s3333_s28  ;;  %s42_s20 = sadd.s32 1, %s3341_s0 }
  0x18   : > { %3977 = sst [smem:[#allocation11_spill]] %s3337_s29  ;;  %p501_p1 = scmp.ne.s32.totalorder %s3325_s26, %s3321_s25 }
  0x19   : > { %3978 = sst [smem:[#allocation12_spill]] %s3341_s0  ;;  %p502_p2 = scmp.eq.s32.totalorder %s2742_s18, 3 }
  0x1a   : > { %3979 = sst [smem:[#allocation13_spill]] %s3345_s30  ;;  %s4031_s1 = smov (%p40_p0, %s39_s1), 0 }
  0x1b   : > { %3980 = sst [smem:[#allocation14_spill]] %s4031_s1  ;;  %s4033_s20 = smov (!%p40_p0, %s42_s20), %s3341_s0 }
  0x1c   : > { %p3489_p3 = por %p502_p2, %p501_p1  ;;  %p507_p4 = scmp.ne.s32.totalorder %s3321_s25, %s3317_s24 }
  0x1d   : > { %p44_p5 = scmp.ge.s32.totalorder %s4033_s20, 2  ;;  %p508_p6 = scmp.eq.s32.totalorder %s2743_s19, 3 }
  0x1e   : > { %s3981_s21 = scalar_select %p3489_p3, 1, 0 }
  0x1f   : > { %p2746_p7 = scmp.ge.s32.totalorder %s3345_s30, 1  ;;  %p644_p8 = scmp.lt.s32.totalorder %s3345_s30, 5 }
  0x20   : > { %3982 = sst [smem:[#allocation15_spill]] %s3981_s21  ;;  %s4035_s20 = smov (%p44_p5, %s4033_s20), 0 }
  0x21   : > { %3983 = sst [smem:[#allocation16_spill]] %s4035_s20  ;;  %p3499_p9 = por %p508_p6, %p507_p4 }
  0x22   : > { %p645_p10 = pnand %p2746_p7, %p644_p8  ;;  %s488_s23 = ssub.s32 %s3341_s0, %s4035_s20 }
  0x23   : > { %s3984_s22 = scalar_select %p3499_p9, 1, 0 }
  0x24   : > { %s491_s18 = sadd.s32 1, %s3325_s26  ;;  %p489_p11 = scmp.eq.s32.totalorder %s488_s23, 0 }
  0x25   : > { %3985 = sst [smem:[#allocation17_spill]] %s3984_s22  ;;  %648 = sbr.rel (%p645_p10) target bundleno = 2420 (0x974), region = 88 }
  0x26   : > { %s3507_s1 = scalar_select %p489_p11, %s3325_s26, %s491_s18  }
  0x28   : > { %3986 = sst [smem:[#allocation18_spill]] %s3507_s1 }
  0x2c   : > { %s3948_s19 = sand.u32 1, %s3321_s25   ;;  %p758_p12 = scmp.lt.s32.totalorder %s3333_s28, 1 }
  0x2d   : > { %s3513_s29 = sshll.u32 %s3948_s19, 3  ;;  %p762_p13 = scmp.lt.s32.totalorder %s3329_s27, 1 }
  0x2e   : > { %s759_s22 = scalar_select %p758_p12, %s3333_s28, 1 }
  0x2f   : > { %s3518_s24 = scalar_select %p762_p13, %s3329_s27, 1 }
  0x30   : > { %s2748_s23 = sshll.u32 %s759_s22, 3  ;;  %s3987_s0 = sld [smem:[#allocation23_spill]] }
  0x31   : > { %s2848_s26 = sshll.u32 %s3518_s24, 6  ;;  %s3988_s17 = sld [smem:[#allocation24_spill]] }
  0x32   : > { %s2751_s25 = sshll.u32 %s3518_s24, 2  ;;  %s3989_s2 = sld [smem:[#allocation25_spill]] }
  0x33   : > { %s3991_s3 = sld [smem:[#allocation26_spill]]  ;;  %s3993_s4 = sld [smem:[#allocation27_spill]] }
  0x34   : > { %s3995_s5 = sld [smem:[#allocation28_spill]]  ;;  %s3996_s6 = sld [smem:[#allocation29_spill]] }
  0x35   : > { %s3997_s7 = sld [smem:[#allocation30_spill]]  ;;  %s4000_s11 = sld [smem:[#allocation32_spill]] }
  0x36   : > { %s761_s1 = scalar_lea.vmem %s3987_s0, %s2748_s23  ;;  %s3585_s20 = scalar_lea.vmem %s3935_s13, %s2848_s26 }
  0x37   : > { %s3527_s21 = scalar_lea.vmem %s3988_s17, %s2848_s26  ;;  %s818_s17 = scalar_lea.vmem %s3936_s14, %s3518_s24 }
  0x38   : > { %s3533_s16 = scalar_lea.vmem %s3989_s2, %s2751_s25  ;;  %s4001_s27 = sld [smem:[#allocation33_spill]] }
  0x39   : > { %3990 = sst [smem:[#allocation19_spill]] %s3533_s16  ;;  %s3538_s0 = scalar_lea.vmem %s3991_s3, %s2848_s26 }
  0x3a   : > { %3992 = sst [smem:[#allocation20_spill]] %s3538_s0  ;;  %s3543_s30 = scalar_lea.vmem %s3993_s4, %s2751_s25 }
  0x3b   : > { %3994 = sst [smem:[#allocation21_spill]] %s3543_s30  ;;  %s3548_s18 = scalar_lea.vmem %s3995_s5, %s2848_s26 }
  0x3c   : > { %s3553_s2 = scalar_lea.vmem %s3996_s6, %s2751_s25  ;;  %s2851_s16 = sshll.u32 %s3518_s24, 4 }
  0x3d   : > { %s3559_s3 = scalar_lea.vmem %s3997_s7, %s2851_s16  ;;  %s3576_s6 = scalar_lea.vmem %s4000_s11, %s2851_s16 }
  0x3e   : > { %3998 = sst [smem:[#allocation22_spill]] %s3559_s3  ;;  %s810_s7 = scalar_lea.vmem %s3934_s12, %s3518_s24 }
  0x3f   : > { %s821_s23 = scalar_lea.vmem %s4001_s27, %s3518_s24  ;;  %s4002_s28 = sld [smem:[#allocation34_spill]] }
  0x40   : > { %s757_s10 = scalar_lea.vmem [#allocation3], %s3513_s29  ;;  %s4003_s15 = sld [smem:[#allocation9_spill]] }
  0x45   : > { %s824_s11 = scalar_lea.vmem %s4002_s28, %s3518_s24 }
  0x46   : > { %p2764_p0 = scmp.ne.s32.totalorder %s4003_s15, 0 }
  0x47   : > { %v830_v0 = vld [vmem:[%s761_s1] sm:$0xff] (!%p2764_p0)  ;;  %vm831_vm0 = vcmask (!%p2764_p0), 261120  }
  0x48   : > { %829 = sbr.rel (%p2764_p0) target bundleno = 79 (0x4f), region = 92  ;;  %832 = vst.msk [vmem:[#allocation2] sm:$0xff] (!%p2764_p0), %vm831_vm0, %v830_v0 }
  0x4f PF: > { %v3195_v1 = vld [vmem:[%s3527_s21] sm:$0xff]   ;;  %v3347_v2 = vmov 0.0   ;;  %v3196_v3 = vld [vmem:[%s3527_s21 + $0x30] sm:$0xff]   ;;  %s4004_s3 = sld [smem:[#allocation20_spill]]  ;;  %v3197_v4 = vld [vmem:[%s3527_s21 + $0x8] sm:$0xff]   ;;  %vm3348_vm1 = vmmov 0   ;;  %s4008_s27 = scalar_lea.vmem %s3930_s8, %s3518_s24 }
  0x50   : > { %2926 = vmatprep.subr.bf16.mxu0 %v3347_v2  ;;  %2950 = vmatprep.subr.bf16.mxu1 %v3347_v2  ;;  %v3198_v5 = vld [vmem:[%s3527_s21 + $0x38] sm:$0xff]   ;;  %v3613_v6 = vld [vmem:[#allocation2] sm:$0xff]  ;;  %vm891_vm2 = vcmask 261120   ;;  %v3199_v8 = vld [vmem:[%s3527_s21 + $0x10] sm:$0xff]   ;;  %s4005_s26 = sld [smem:[#allocation21_spill]]  ;;  %s4006_s1 = sld [smem:[#allocation19_spill]] }
  0x51   : > { %2927 = vmatpush3.bf16.msra.mxu0 %v3195_v1  ;;  %2930 = vmatprep.mubr.msk.bf16.mxu0 %vm3348_vm1, %v3347_v2  ;;  %v3617_v7 = vpack.c.bf16 %v3613_v6, %v3613_v6  ;;  %v3201_v10 = vld [vmem:[%s3527_s21 + $0x18] sm:$0xff]   ;;  %v3203_v12 = vld [vmem:[%s3527_s21 + $0x20] sm:$0xff]   ;;  %v3205_v14 = vld [vmem:[%s3527_s21 + $0x28] sm:$0xff]   ;;  %vm1603_vm3 = vcmask 64512   ;;  %vm1843_vm4 = vcmask 1043456   ;;  %s4007_s21 = sld [smem:[#allocation22_spill]]  ;;  %s4009_s4 = scalar_lea.vmem %s3931_s9, %s3518_s24 }
  0x52   : > { %2951 = vmatpush3.bf16.msra.mxu1 %v3196_v3  ;;  %2928 = vmatprep.subr.bf16.mxu0 %v3347_v2  ;;  %v3211_v17 = vld [vmem:[%s3548_s18 + $0x10] sm:$0xff]   ;;  %v3212_v19 = vld [vmem:[%s3548_s18 + $0x18] sm:$0xff]   ;;  %v3215_v24 = vld [vmem:[%s3548_s18] sm:$0xff]   ;;  %s4010_s5 = sld [smem:[#allocation31_spill]] }
  0x53   : > { %2952 = vmatprep.subr.bf16.mxu1 %v3347_v2  ;;  %2954 = vmatprep.mubr.msk.bf16.mxu1 %vm3348_vm1, %v3347_v2  ;;  %v3213_v22 = vld [vmem:[%s3548_s18 + $0x30] sm:$0xff]   ;;  %v3214_v23 = vld [vmem:[%s3548_s18 + $0x38] sm:$0xff]   ;;  %v3216_v25 = vld [vmem:[%s3548_s18 + $0x8] sm:$0xff]  }
  0x54   : > { %v3217_v26 = vld [vmem:[%s3548_s18 + $0x20] sm:$0xff]   ;;  %v3218_v27 = vld [vmem:[%s3548_s18 + $0x28] sm:$0xff]  }
  0x55   : > { %2929 = vmatpush3.bf16.msra.mxu0 %v3197_v4  ;;  %v3200_v9 = vld [vmem:[%s4004_s3 + $0x10] sm:$0xff]   ;;  %v3202_v11 = vld [vmem:[%s4004_s3 + $0x18] sm:$0xff]   ;;  %v3207_v16 = vld [vmem:[%s4004_s3] sm:$0xff]  }
  0x56   : > { %2953 = vmatpush3.bf16.msra.mxu1 %v3198_v5  ;;  %2934 = vmatprep.subr.bf16.mxu0 %v3347_v2  ;;  %v3204_v13 = vld [vmem:[%s4004_s3 + $0x30] sm:$0xff]   ;;  %v3206_v15 = vld [vmem:[%s4004_s3 + $0x38] sm:$0xff]   ;;  %v3208_v18 = vld [vmem:[%s4004_s3 + $0x8] sm:$0xff]  }
  0x57   : > { %2966 = vmatprep.subr.bf16.mxu1 %v3347_v2  ;;  %v3209_v20 = vld [vmem:[%s4004_s3 + $0x20] sm:$0xff]   ;;  %v3210_v21 = vld [vmem:[%s4004_s3 + $0x28] sm:$0xff]  }
  0x58   : > { %2931 = vmatmul.mubr.msk.bf16.vlgmr.msra.gmra.mrb[0].mxu0 %vm891_vm2, %v3617_v7  ;;  %v2782_v36 = vld [vmem:[%s4005_s26 + $0x1] ss:$0 sm:$0xff]  ;;  %v2784_v49 = vld [vmem:[%s4005_s26 + $0x3] ss:$0 sm:$0xff]  ;;  %v2781_v0 = vld [vmem:[%s4005_s26] ss:$0 sm:$0xff]  ;;  %s4011_s19 = scalar_lea.vmem %s4010_s5, %s3518_s24 }
  0x59   : > { %2955 = vmatmul.mubr.msk.bf16.vlgmr.msra.gmra.mrb[0].mxu1 %vm891_vm2, %v3617_v7  ;;  %2935 = vmatpush3.bf16.msra.mxu0 %v3199_v8  ;;  %v2766_v47 = vld [vmem:[%s4006_s1 + $0x1] ss:$0 sm:$0xff]  ;;  %v2768_v62 = vld [vmem:[%s4006_s1 + $0x3] ss:$0 sm:$0xff] }
  0x5a   : > { %2967 = vmatpush3.bf16.msra.mxu1 %v3200_v9  ;;  %2936 = vmatprep.subr.bf16.mxu0 %v3347_v2  ;;  %v2798_v4 = vld [vmem:[%s3553_s2 + $0x1] ss:$0 sm:$0xff] }
  0x5b   : > { %2968 = vmatprep.subr.bf16.mxu1 %v3347_v2  ;;  %2938 = vmatprep.mubr.msk.bf16.mxu0 %vm3348_vm1, %v3347_v2 }
  0x5c   : > { %2970 = vmatprep.mubr.msk.bf16.mxu1 %vm3348_vm1, %v3347_v2 }
  0x5d   : > { %2937 = vmatpush3.bf16.msra.mxu0 %v3201_v10 }
  0x5e   : > { %2969 = vmatpush3.bf16.msra.mxu1 %v3202_v11  ;;  %2942 = vmatprep.subr.bf16.mxu0 %v3347_v2 }
  0x5f   : > { %2982 = vmatprep.subr.bf16.mxu1 %v3347_v2 }
  0x60   : > { %2939 = vmatmul.mubr.msk.bf16.vlgmr.msra.gmra.mrb[4].mxu0 %vm891_vm2, %v3617_v7 }
  0x61   : > { %2971 = vmatmul.mubr.msk.bf16.vlgmr.msra.gmra.mrb[4].mxu1 %vm891_vm2, %v3617_v7  ;;  %2943 = vmatpush3.bf16.msra.mxu0 %v3203_v12 }
  0x62   : > { %2983 = vmatpush3.bf16.msra.mxu1 %v3204_v13  ;;  %2944 = vmatprep.subr.bf16.mxu0 %v3347_v2 }
  0x63   : > { %2984 = vmatprep.subr.bf16.mxu1 %v3347_v2  ;;  %2946 = vmatprep.mubr.msk.bf16.mxu0 %vm3348_vm1, %v3347_v2 }
  0x64   : > { %2986 = vmatprep.mubr.msk.bf16.mxu1 %vm3348_vm1, %v3347_v2 }
  0x65   : > { %2945 = vmatpush3.bf16.msra.mxu0 %v3205_v14  ;;  %v2765_v14 = vld [vmem:[%s4006_s1] ss:$0 sm:$0xff] }
  0x66   : > { %2985 = vmatpush3.bf16.msra.mxu1 %v3206_v15  ;;  %2958 = vmatprep.subr.bf16.mxu0 %v3347_v2 }
  0x67   : > { %2998 = vmatprep.subr.bf16.mxu1 %v3347_v2 }
  0x68   : > { %2947 = vmatmul.mubr.msk.bf16.vlgmr.msra.gmra.mrb[8].mxu0 %vm891_vm2, %v3617_v7 }
  0x69   : > { %2987 = vmatmul.mubr.msk.bf16.vlgmr.msra.gmra.mrb[8].mxu1 %vm891_vm2, %v3617_v7  ;;  %2959 = vmatpush3.bf16.msra.mxu0 %v3207_v16 }
  0x6a   : > { %2960 = vmatprep.subr.bf16.mxu0 %v3347_v2  ;;  %2962 = vmatprep.mubr.msk.bf16.mxu0 %vm3348_vm1, %v3347_v2 }
  0x6b   : > { %2999 = vmatpush3.bf16.msra.mxu1 %v3211_v17  ;;  %3002 = vmatprep.mubr.msk.bf16.mxu1 %vm3348_vm1, %v3347_v2 }
  0x6c   : > { %3000 = vmatprep.subr.bf16.mxu1 %v3347_v2 }
  0x6d   : > { %2961 = vmatpush3.bf16.msra.mxu0 %v3208_v18 }
  0x6e   : > { %2974 = vmatprep.subr.bf16.mxu0 %v3347_v2 }
  0x6f   : > { %3001 = vmatpush3.bf16.msra.mxu1 %v3212_v19 }
  0x70   : > { %2963 = vmatmul.mubr.msk.bf16.vlgmr.msra.gmra.mrb[12].mxu0 %vm891_vm2, %v3617_v7  ;;  %3014 = vmatprep.subr.bf16.mxu1 %v3347_v2 }
  0x71   : > { %2975 = vmatpush3.bf16.msra.mxu0 %v3209_v20  ;;  %2978 = vmatprep.mubr.msk.bf16.mxu0 %vm3348_vm1, %v3347_v2  ;;  %v2783_v20 = vld [vmem:[%s4005_s26 + $0x2] ss:$0 sm:$0xff] }
  0x72   : > { %2976 = vmatprep.subr.bf16.mxu0 %v3347_v2  ;;  %3003 = vmatmul.mubr.msk.bf16.vlgmr.msra.gmra.mrb[12].mxu1 %vm891_vm2, %v3617_v7 }
  0x73   : > { %3018 = vmatprep.mubr.msk.bf16.mxu1 %vm3348_vm1, %v3347_v2  ;;  %3015 = vmatpush3.bf16.msra.mxu1 %v3213_v22 }
  0x74   : > { %3016 = vmatprep.subr.bf16.mxu1 %v3347_v2 }
  0x75   : > { %2977 = vmatpush3.bf16.msra.mxu0 %v3210_v21 }
  0x76   : > { %2990 = vmatprep.subr.bf16.mxu0 %v3347_v2 }
  0x77   : > { %3017 = vmatpush3.bf16.msra.mxu1 %v3214_v23 }
  0x78   : > { %2979 = vmatmul.mubr.msk.bf16.vlgmr.msra.gmra.mrb[16].mxu0 %vm891_vm2, %v3617_v7  ;;  %3028 = vmatprep.subr.bf16.mxu1 %v3347_v2 }
  0x79   : > { %2994 = vmatprep.mubr.msk.bf16.mxu0 %vm3348_vm1, %v3347_v2  ;;  %2991 = vmatpush3.bf16.msra.mxu0 %v3215_v24 }
  0x7a   : > { %2992 = vmatprep.subr.bf16.mxu0 %v3347_v2  ;;  %3019 = vmatmul.mubr.msk.bf16.vlgmr.msra.gmra.mrb[16].mxu1 %vm891_vm2, %v3617_v7 }
  0x7b   : > { %3030 = vmatprep.mubr.msk.bf16.mxu1 %vm3348_vm1, %v3347_v2 }
  0x7d   : > { %2993 = vmatpush3.bf16.msra.mxu0 %v3216_v25 }
  0x7e   : > { %3006 = vmatprep.subr.bf16.mxu0 %v3347_v2 }
  0x80   : > { %2995 = vmatmul.mubr.msk.bf16.vlgmr.msra.gmra.mrb[20].mxu0 %vm891_vm2, %v3617_v7 }
  0x81   : > { %3010 = vmatprep.mubr.msk.bf16.mxu0 %vm3348_vm1, %v3347_v2  ;;  %3007 = vmatpush3.bf16.msra.mxu0 %v3217_v26 }
  0x82   : > { %3008 = vmatprep.subr.bf16.mxu0 %v3347_v2 }
  0x85   : > { %3009 = vmatpush3.bf16.msra.mxu0 %v3218_v27 }
  0x86   : > { %3022 = vmatprep.subr.bf16.mxu0 %v3347_v2 }
  0x88   : > { %3011 = vmatmul.mubr.msk.bf16.vlgmr.msra.gmra.mrb[24].mxu0 %vm891_vm2, %v3617_v7 }
  0x89   : > { %3024 = vmatprep.mubr.msk.bf16.mxu0 %vm3348_vm1, %v3347_v2 }
 0x12b   : > { %v3709_v28 = vpop.f32.mrb[0].mxu0 }
 0x12c   : > { %v2932_v29 = vpop.f32.mrb[1].mxu0  ;;  %v1085_v30 = vpop.f32.mrb[0].mxu1  ;;  %v930_v21 = vadd.f32 %v2765_v14, %v3709_v28 }
 0x12d   : > { %v932_v31 = vpop.f32.mrb[2].mxu0  ;;  %v2956_v32 = vpop.f32.mrb[1].mxu1  ;;  %v1086_v1 = vadd.f32 %v2768_v62, %v1085_v30 }
 0x12e   : > { %v2933_v33 = vpop.f32.mrb[3].mxu0  ;;  %v1088_v34 = vpop.f32.mrb[2].mxu1  ;;  %v1595_v27 = vpack.c.bf16 %v930_v21, %v930_v21  ;;  %v2767_v31 = vld [vmem:[%s4006_s1 + $0x2] ss:$0 sm:$0xff] }
 0x12f   : > { %v2957_v35 = vpop.f32.mrb[3].mxu1  ;;  %v1598_v15 = vpack.c.bf16 %v1086_v1, %v1086_v1 }
 0x133   : > { %v981_v37 = vpop.f32.mrb[4].mxu0 }
 0x134   : > { %v1233_v38 = vpop.f32.mrb[4].mxu1  ;;  %v2940_v39 = vpop.f32.mrb[5].mxu0  ;;  %v982_v50 = vadd.f32 %v2766_v47, %v981_v37 }
 0x135   : > { %v1234_v40 = vadd.f32 %v2782_v36, %v1233_v38  ;;  %v984_v41 = vpop.f32.mrb[6].mxu0  ;;  %v2972_v42 = vpop.f32.mrb[5].mxu1  ;;  %v2797_v38 = vld [vmem:[%s3553_s2] ss:$0 sm:$0xff] }
 0x136   : > { %v2941_v43 = vpop.f32.mrb[7].mxu0  ;;  %v1236_v44 = vpop.f32.mrb[6].mxu1  ;;  %v1596_v59 = vpack.c.bf16 %v982_v50, %v982_v50 }
 0x137   : > { %v1600_v45 = vpack.c.bf16 %v1234_v40, %v1234_v40  ;;  %v2973_v46 = vpop.f32.mrb[7].mxu1 }
 0x139   : > { %v1654_v48 = vsel %vm1603_vm3, %v1600_v45, 0 }
 0x13a   : > { %3029 = vmatpush3.bf16.xpose.msra.mxu1 %v1654_v48 }
 0x13b   : > { %v1033_v51 = vpop.f32.mrb[8].mxu0  ;;  %3040 = vmatprep.subr.bf16.mxu1 %v3347_v2 }
 0x13c   : > { %v1337_v52 = vpop.f32.mrb[8].mxu1  ;;  %v2948_v53 = vpop.f32.mrb[9].mxu0  ;;  %v1034_v32 = vadd.f32 %v2767_v31, %v1033_v51  ;;  %v2799_v31 = vld [vmem:[%s3553_s2 + $0x2] ss:$0 sm:$0xff] }
 0x13d   : > { %v1338_v54 = vadd.f32 %v2784_v49, %v1337_v52  ;;  %v1036_v55 = vpop.f32.mrb[10].mxu0  ;;  %v2988_v56 = vpop.f32.mrb[9].mxu1 }
 0x13e   : > { %v2949_v57 = vpop.f32.mrb[11].mxu0  ;;  %v1340_v58 = vpop.f32.mrb[10].mxu1  ;;  %v1597_v33 = vpack.c.bf16 %v1034_v32, %v1034_v32 }
 0x13f   : > { %v1602_v60 = vpack.c.bf16 %v1338_v54, %v1338_v54  ;;  %v2989_v61 = vpop.f32.mrb[11].mxu1 }
 0x141   : > { %v1746_v63 = vsel %vm1603_vm3, %v1602_v60, 0  ;;  %3031 = vmatmul.mubr.msk.bf16.vlgmr.msra.gmra.mrb[20].mxu1 %vm1603_vm3, %v1596_v59 }
 0x142   : > { %3041 = vmatpush3.bf16.xpose.msra.mxu1 %v1746_v63  ;;  %3042 = vmatprep.mubr.msk.bf16.mxu1 %vm3348_vm1, %v3347_v2 }
 0x143   : > { %v1181_v3 = vpop.f32.mrb[12].mxu0  ;;  %3052 = vmatprep.subr.bf16.mxu1 %v3347_v2 }
 0x144   : > { %v1182_v5 = vadd.f32 %v2781_v0, %v1181_v3  ;;  %v2964_v7 = vpop.f32.mrb[13].mxu0 }
 0x145   : > { %v1184_v8 = vpop.f32.mrb[14].mxu0  ;;  %v1485_v9 = vpop.f32.mrb[12].mxu1 }
 0x146   : > { %v1599_v10 = vpack.c.bf16 %v1182_v5, %v1182_v5  ;;  %v2965_v11 = vpop.f32.mrb[15].mxu0  ;;  %v1486_v12 = vadd.f32 %v2798_v4, %v1485_v9  ;;  %v3004_v13 = vpop.f32.mrb[13].mxu1 }
 0x147   : > { %v1488_v16 = vpop.f32.mrb[14].mxu1 }
 0x148   : > { %v1608_v17 = vsel %vm1603_vm3, %v1599_v10, 0  ;;  %v1837_v18 = vpack.c.bf16 %v1486_v12, %v1486_v12  ;;  %v3005_v19 = vpop.f32.mrb[15].mxu1 }
 0x149   : > { %3043 = vmatmul.mubr.msk.bf16.vlgmr.msra.gmra.mrb[24].mxu1 %vm1603_vm3, %v1598_v15  ;;  %3023 = vmatpush3.bf16.xpose.msra.mxu0 %v1608_v17 }
 0x14a   : > { %3034 = vmatprep.subr.bf16.mxu0 %v3347_v2  ;;  %v1891_v22 = vsel %vm1843_vm4, %v1837_v18, 0  ;;  %3054 = vmatprep.mubr.msk.bf16.mxu1 %vm3348_vm1, %v3347_v2 }
 0x14b   : > { %v1285_v23 = vpop.f32.mrb[16].mxu0  ;;  %3053 = vmatpush3.bf16.msra.mxu1 %v1891_v22 }
 0x14c   : > { %v1286_v24 = vadd.f32 %v2783_v20, %v1285_v23  ;;  %v2980_v25 = vpop.f32.mrb[17].mxu0  ;;  %3064 = vmatprep.subr.bf16.mxu1 %v3347_v2 }
 0x14d   : > { %v1288_v26 = vpop.f32.mrb[18].mxu0  ;;  %v3743_v34 = vpop.f32.mrb[16].mxu1 }
 0x14e   : > { %v1601_v29 = vpack.c.bf16 %v1286_v24, %v1286_v24  ;;  %v2981_v30 = vpop.f32.mrb[19].mxu0  ;;  %v3020_v35 = vpop.f32.mrb[17].mxu1 }
 0x14f   : > { %v1592_v36 = vpop.f32.mrb[18].mxu1 }
 0x150   : > { %v1700_v28 = vsel %vm1603_vm3, %v1601_v29, 0  ;;  %3025 = vmatmul.mubr.msk.bf16.vlgmr.msra.gmra.mrb[28].mxu0 %vm1603_vm3, %v1595_v27  ;;  %v3021_v37 = vpop.f32.mrb[19].mxu1 }
 0x151   : > { %3035 = vmatpush3.bf16.xpose.msra.mxu0 %v1700_v28  ;;  %3036 = vmatprep.mubr.msk.bf16.mxu0 %vm3348_vm1, %v3347_v2 }
 0x152   : > { %3046 = vmatprep.subr.bf16.mxu0 %v3347_v2 }
 0x153   : > { %v1433_v39 = vpop.f32.mrb[20].mxu0 }
 0x154   : > { %v1434_v40 = vadd.f32 %v2797_v38, %v1433_v39  ;;  %v2996_v41 = vpop.f32.mrb[21].mxu0 }
 0x155   : > { %v1436_v42 = vpop.f32.mrb[22].mxu0 }
 0x156   : > { %v1836_v43 = vpack.c.bf16 %v1434_v40, %v1434_v40  ;;  %v2997_v44 = vpop.f32.mrb[23].mxu0 }
 0x158   : > { %3037 = vmatmul.mubr.msk.bf16.vlgmr.msra.gmra.mrb[32].mxu0 %vm1603_vm3, %v1597_v33  ;;  %v1845_v45 = vsel %vm1843_vm4, %v1836_v43, 0  ;;  %v2800_v33 = vld [vmem:[%s3553_s2 + $0x3] ss:$0 sm:$0xff] }
 0x159   : > { %3048 = vmatprep.mubr.msk.bf16.mxu0 %vm3348_vm1, %v3347_v2  ;;  %3047 = vmatpush3.bf16.msra.mxu0 %v1845_v45  ;;  %v1590_v36 = vadd.f32 %v2800_v33, %v3743_v34 }
 0x15a   : > { %3058 = vmatprep.subr.bf16.mxu0 %v3347_v2 }
 0x15b   : > { %v1537_v46 = vpop.f32.mrb[24].mxu0  ;;  %v1839_v42 = vpack.c.bf16 %v1590_v36, %v1590_v36 }
 0x15c   : > { %v3012_v47 = vpop.f32.mrb[25].mxu0  ;;  %v1538_v28 = vadd.f32 %v2799_v31, %v1537_v46  ;;  %v2029_v46 = vld [vmem:[%s4007_s21] sm:$0xf] }
 0x15d   : > { %v1540_v48 = vpop.f32.mrb[26].mxu0  ;;  %v1983_v47 = vsel %vm1843_vm4, %v1839_v42, 0 }
 0x15e   : > { %v3013_v49 = vpop.f32.mrb[27].mxu0  ;;  %v1838_v37 = vpack.c.bf16 %v1538_v28, %v1538_v28 }
 0x160   : > { %v1937_v43 = vsel %vm1843_vm4, %v1838_v37, 0 }
 0x214   : > { %v1690_v50 = vpop.f32.mrb[20].mxu1 }
 0x215   : > { %v3032_v51 = vpop.f32.mrb[21].mxu1  ;;  %v1791_v63 = vsel %vm1603_vm3, %v1690_v50, -inf }
 0x216   : > { %v1693_v52 = vpop.f32.mrb[22].mxu1 }
 0x217   : > { %v3033_v53 = vpop.f32.mrb[23].mxu1 }
 0x21c   : > { %v1782_v54 = vpop.f32.mrb[24].mxu1 }
 0x21d   : > { %v3044_v55 = vpop.f32.mrb[25].mxu1  ;;  %v1797_v7 = vsel %vm1603_vm3, %v1782_v54, -inf }
 0x21e   : > { %v1785_v56 = vpop.f32.mrb[26].mxu1 }
 0x21f   : > { %v3045_v57 = vpop.f32.mrb[27].mxu1  ;;  %v2031_v56 = vld [vmem:[%s4007_s21 + $0x8] sm:$0xf] }
 0x223   : > { %v1644_v58 = vpop.f32.mrb[28].mxu0 }
 0x224   : > { %v3026_v59 = vpop.f32.mrb[29].mxu0  ;;  %v1788_v60 = vsel %vm1603_vm3, %v1644_v58, -inf }
 0x225   : > { %1789 = vmax.xlane.f32.xlu0 %v1788_v60  ;;  %v1647_v61 = vpop.f32.mrb[30].mxu0  ;;  %v2129_v60 = vsel %vm1843_vm4, %v2031_v56, 0  ;;  %v2826_v56 = vld [vmem:[%s4009_s4] ss:$0 sm:$0xff] }
 0x226   : > { %v3027_v62 = vpop.f32.mrb[31].mxu0 }
 0x227   : > { %v2032_v62 = vld [vmem:[%s4007_s21 + $0xc] sm:$0xf] }
 0x229   : > { %1792 = vmax.xlane.f32.xlu0 %v1791_v63 }
 0x22b   : > { %v1736_v0 = vpop.f32.mrb[32].mxu0 }
 0x22c   : > { %v3038_v1 = vpop.f32.mrb[33].mxu0  ;;  %v1794_v3 = vsel %vm1603_vm3, %v1736_v0, -inf }
 0x22d   : > { %1795 = vmax.xlane.f32.xlu1 %v1794_v3  ;;  %v1739_v4 = vpop.f32.mrb[34].mxu0 }
 0x22e   : > { %v3039_v5 = vpop.f32.mrb[35].mxu0  ;;  %v2175_v4 = vsel %vm1843_vm4, %v2032_v62, 0  ;;  %v3222_v62 = vld [vmem:[%s3585_s20 + $0x8] sm:$0xff]  }
 0x231   : > { %1798 = vmax.xlane.f32.xlu1 %v1797_v7 }
 0x2b2   : > { %v1790_v8 = vpop.xlane.xlu0 %1789 }
 0x2b3   : > { %v1800_v9 = vsub.f32 %v1644_v58, %v1790_v8 }
 0x2b5   : > { %v1804_v10 = vmul.f32 1.442695, %v1800_v9 }
 0x2b6   : > { %v1793_v11 = vpop.xlane.xlu0 %1792 }
 0x2b7   : > { %3229 = vpow2.f32 %v1804_v10  ;;  %v1801_v12 = vsub.f32 %v1690_v50, %v1793_v11  ;;  %v2037_v50 = vsel %vm1843_vm4, %v2029_v46, 0 }
 0x2b9   : > { %v1806_v13 = vmul.f32 1.442695, %v1801_v12 }
 0x2ba   : > { %v1796_v14 = vpop.xlane.xlu1 %1795 }
 0x2bb   : > { %3231 = vpow2.f32 %v1806_v13  ;;  %v1802_v15 = vsub.f32 %v1736_v0, %v1796_v14 }
 0x2bd   : > { %v1808_v16 = vmul.f32 1.442695, %v1802_v15 }
 0x2be   : > { %v1799_v17 = vpop.xlane.xlu1 %1798 }
 0x2bf   : > { %3233 = vpow2.f32 %v1808_v16  ;;  %v1803_v18 = vsub.f32 %v1782_v54, %v1799_v17  ;;  %v2030_v54 = vld [vmem:[%s4007_s21 + $0x4] sm:$0xf]  ;;  %s4014_s21 = sld [smem:[#allocation9_spill]] }
 0x2c0   : > { %v2083_v55 = vsel %vm1843_vm4, %v2030_v54, 0 }
 0x2c1   : > { %v3230_v19 = vpop.eup %3229  ;;  %v1810_v20 = vmul.f32 1.442695, %v1803_v18 }
 0x2c2   : > { %v1812_v21 = vsel %vm1603_vm3, %v3230_v19, 0.0 }
 0x2c3   : > { %3235 = vpow2.f32 %v1810_v20  ;;  %1813 = vadd.xlane.f32.xlu0 %v1812_v21 }
 0x2c5   : > { %v3232_v22 = vpop.eup %3231  ;;  %p2843_p1 = scmp.ne.s32.totalorder %s4014_s21, 1 }
 0x2c6   : > { %v1815_v23 = vsel %vm1603_vm3, %v3232_v22, 0.0 }
 0x2c7   : > { %1816 = vadd.xlane.f32.xlu1 %v1815_v23 }
 0x2c9   : > { %v3234_v24 = vpop.eup %3233 }
 0x2ca   : > { %v1818_v25 = vsel %vm1603_vm3, %v3234_v24, 0.0 }
 0x2cb   : > { %1819 = vadd.xlane.f32.xlu0 %v1818_v25 }
 0x2cd   : > { %v3236_v26 = vpop.eup %3235 }
 0x2ce   : > { %v1821_v27 = vsel %vm1603_vm3, %v3236_v26, 0.0 }
 0x2cf   : > { %1822 = vadd.xlane.f32.xlu1 %v1821_v27 }
 0x350   : > { %v1814_v29 = vpop.xlane.xlu0 %1813 }
 0x351   : > { %3237 = vrcp.f32 %v1814_v29 }
 0x354   : > { %v1817_v30 = vpop.xlane.xlu1 %1816 }
 0x355   : > { %3239 = vrcp.f32 %v1817_v30 }
 0x358   : > { %v1820_v32 = vpop.xlane.xlu0 %1819 }
 0x359   : > { %3241 = vrcp.f32 %v1820_v32 }
 0x35b   : > { %v3238_v35 = vpop.eup %3237 }
 0x35c   : > { %v1828_v38 = vmul.f32 %v3238_v35, %v3230_v19  ;;  %v1823_v39 = vpop.xlane.xlu1 %1822 }
 0x35d   : > { %3243 = vrcp.f32 %v1823_v39 }
 0x35e   : > { %v1832_v40 = vpack.c.bf16 %v1828_v38, %v1828_v38  ;;  %v2825_v38 = vld [vmem:[%s4008_s27] ss:$0 sm:$0xff] }
 0x35f   : > { %v3240_v41 = vpop.eup %3239 }
 0x360   : > { %v1829_v44 = vmul.f32 %v3240_v41, %v3232_v22  ;;  %3049 = vmatmul.mubr.msk.bf16.vlgmr.msra.gmra.mrb[36].mxu0 %vm1603_vm3, %v1832_v40 }
 0x361   : > { %3059 = vmatpush3.bf16.msra.mxu0 %v1937_v43  ;;  %3060 = vmatprep.mubr.msk.bf16.mxu0 %vm3348_vm1, %v3347_v2 }
 0x362   : > { %v1833_v45 = vpack.c.bf16 %v1829_v44, %v1829_v44  ;;  %3070 = vmatprep.subr.bf16.mxu0 %v3347_v2 }
 0x363   : > { %v3242_v34 = vpop.eup %3241 }
 0x364   : > { %v1830_v48 = vmul.f32 %v3242_v34, %v3234_v24  ;;  %3055 = vmatmul.mubr.msk.bf16.vlgmr.msra.gmra.mrb[28].mxu1 %vm1603_vm3, %v1833_v45 }
 0x365   : > { %3065 = vmatpush3.bf16.msra.mxu1 %v1983_v47  ;;  %3066 = vmatprep.mubr.msk.bf16.mxu1 %vm3348_vm1, %v3347_v2 }
 0x366   : > { %v1834_v49 = vpack.c.bf16 %v1830_v48, %v1830_v48  ;;  %3076 = vmatprep.subr.bf16.mxu1 %v3347_v2 }
 0x367   : > { %v3244_v51 = vpop.eup %3243 }
 0x368   : > { %v1831_v52 = vmul.f32 %v3244_v51, %v3236_v26  ;;  %3061 = vmatmul.mubr.msk.bf16.vlgmr.msra.gmra.mrb[40].mxu0 %vm1603_vm3, %v1834_v49  ;;  %v3220_v51 = vld [vmem:[%s3576_s6 + $0x8] sm:$0xff]  }
 0x369   : > { %3071 = vmatpush3.bf16.msra.mxu0 %v2037_v50  ;;  %3072 = vmatprep.mubr.msk.bf16.mxu0 %vm3348_vm1, %v3347_v2  ;;  %v3219_v50 = vld [vmem:[%s3576_s6] sm:$0xff]  }
 0x36a   : > { %v1835_v53 = vpack.c.bf16 %v1831_v52, %v1831_v52  ;;  %3082 = vmatprep.subr.bf16.mxu0 %v3347_v2 }
 0x36c   : > { %3067 = vmatmul.mubr.msk.bf16.vlgmr.msra.gmra.mrb[32].mxu1 %vm1603_vm3, %v1835_v53 }
 0x36d   : > { %3078 = vmatprep.mubr.msk.bf16.mxu1 %vm3348_vm1, %v3347_v2  ;;  %3077 = vmatpush3.bf16.msra.mxu1 %v2083_v55 }
 0x36e   : > { %3088 = vmatprep.subr.bf16.mxu1 %v3347_v2 }
 0x433   : > { %v1881_v57 = vpop.f32.mrb[36].mxu0 }
 0x434   : > { %v2025_v58 = vpack.c.bf16 %v1881_v57, %v1881_v57  ;;  %v3050_v59 = vpop.f32.mrb[37].mxu0 }
 0x435   : > { %v1884_v61 = vpop.f32.mrb[38].mxu0 }
 0x436   : > { %v3051_v63 = vpop.f32.mrb[39].mxu0  ;;  %3073 = vmatmul.mubr.msk.bf16.vlgmr.msra.gmra.mrb[44].mxu0 %vm1603_vm3, %v2025_v58  ;;  %v2827_v58 = vld [vmem:[%s4011_s19] ss:$0 sm:$0xff] }
 0x437   : > { %v1927_v0 = vpop.f32.mrb[28].mxu1  ;;  %3083 = vmatpush3.bf16.msra.mxu0 %v2129_v60  ;;  %3084 = vmatprep.mubr.msk.bf16.mxu0 %vm3348_vm1, %v3347_v2  ;;  %v3223_v63 = vld [vmem:[%s3585_s20 + $0x10] sm:$0xff]  }
 0x438   : > { %v2026_v1 = vpack.c.bf16 %v1927_v0, %v1927_v0  ;;  %v3056_v3 = vpop.f32.mrb[29].mxu1  ;;  %3094 = vmatprep.subr.bf16.mxu0 %v3347_v2  ;;  %v3224_v0 = vld [vmem:[%s3585_s20 + $0x18] sm:$0xff]  }
 0x439   : > { %v1930_v5 = vpop.f32.mrb[30].mxu1  ;;  %v3226_v3 = vld [vmem:[%s3585_s20 + $0x28] sm:$0xff]  }
 0x43a   : > { %v3057_v7 = vpop.f32.mrb[31].mxu1  ;;  %3079 = vmatmul.mubr.msk.bf16.vlgmr.msra.gmra.mrb[36].mxu1 %vm1603_vm3, %v2026_v1  ;;  %v3225_v1 = vld [vmem:[%s3585_s20 + $0x20] sm:$0xff]   ;;  %v3228_v5 = vld [vmem:[%s3585_s20 + $0x38] sm:$0xff]  }
 0x43b   : > { %v1973_v8 = vpop.f32.mrb[40].mxu0  ;;  %3089 = vmatpush3.bf16.msra.mxu1 %v2175_v4  ;;  %3090 = vmatprep.mubr.msk.bf16.mxu1 %vm3348_vm1, %v3347_v2  ;;  %v3227_v4 = vld [vmem:[%s3585_s20 + $0x30] sm:$0xff]   ;;  %v2828_v7 = vld [vmem:[%s810_s7] ss:$0 sm:$0xff] }
 0x43c   : > { %v2027_v9 = vpack.c.bf16 %v1973_v8, %v1973_v8  ;;  %v3062_v10 = vpop.f32.mrb[41].mxu0  ;;  %3102 = vmatprep.subr.bf16.mxu1 %v3347_v2 }
 0x43d   : > { %v1976_v11 = vpop.f32.mrb[42].mxu0 }
 0x43e   : > { %v3063_v12 = vpop.f32.mrb[43].mxu0  ;;  %3085 = vmatmul.mubr.msk.bf16.vlgmr.msra.gmra.mrb[48].mxu0 %vm1603_vm3, %v2027_v9 }
 0x43f   : > { %v2019_v13 = vpop.f32.mrb[32].mxu1  ;;  %3098 = vmatprep.mubr.msk.bf16.mxu0 %vm3348_vm1, %v3347_v2  ;;  %3095 = vmatpush3.bf16.msra.mxu0 %v3219_v50 }
 0x440   : > { %v2028_v14 = vpack.c.bf16 %v2019_v13, %v2019_v13  ;;  %v3068_v15 = vpop.f32.mrb[33].mxu1  ;;  %3096 = vmatprep.subr.bf16.mxu0 %v3347_v2 }
 0x441   : > { %v2022_v16 = vpop.f32.mrb[34].mxu1 }
 0x442   : > { %v3069_v17 = vpop.f32.mrb[35].mxu1  ;;  %3091 = vmatmul.mubr.msk.bf16.vlgmr.msra.gmra.mrb[40].mxu1 %vm1603_vm3, %v2028_v14 }
 0x443   : > { %3118 = vmatprep.mubr.msk.bf16.mxu1 %vm3348_vm1, %v3347_v2  ;;  %3097 = vmatpush3.bf16.msra.mxu0 %v3220_v51 }
 0x509   : > { %v2073_v18 = vpop.f32.mrb[44].mxu0 }
 0x50a   : > { %v3074_v19 = vpop.f32.mrb[45].mxu0  ;;  %v2217_v23 = vsel %vm891_vm2, %v2073_v18, 0.0 }
 0x50b   : > { %v2076_v20 = vpop.f32.mrb[46].mxu0 }
 0x50c   : > { %v3075_v21 = vpop.f32.mrb[47].mxu0 }
 0x50d   : > { %v2119_v22 = vpop.f32.mrb[36].mxu1 }
 0x50e   : > { %v2218_v24 = vsel %vm891_vm2, %v2119_v22, 0.0  ;;  %v3080_v25 = vpop.f32.mrb[37].mxu1  ;;  %v2832_v22 = vld [vmem:[%s818_s17] ss:$0 sm:$0xff] }
 0x50f   : > { %v2219_v26 = vadd.f32 %v2218_v24, %v2217_v23  ;;  %v2122_v27 = vpop.f32.mrb[38].mxu1 }
 0x510   : > { %v3081_v29 = vpop.f32.mrb[39].mxu1 }
 0x511   : > { %v2165_v30 = vpop.f32.mrb[48].mxu0 }
 0x512   : > { %v2220_v31 = vsel %vm891_vm2, %v2165_v30, 0.0  ;;  %v3086_v28 = vpop.f32.mrb[49].mxu0 }
 0x513   : > { %v2221_v32 = vadd.f32 %v2220_v31, %v2219_v26  ;;  %v2168_v33 = vpop.f32.mrb[50].mxu0 }
 0x514   : > { %v3087_v35 = vpop.f32.mrb[51].mxu0 }
 0x515   : > { %v2211_v36 = vpop.f32.mrb[40].mxu1 }
 0x516   : > { %v2222_v37 = vsel %vm891_vm2, %v2211_v36, 0.0  ;;  %v3092_v39 = vpop.f32.mrb[41].mxu1 }
 0x517   : > { %v2223_v40 = vadd.f32 %v2222_v37, %v2221_v32  ;;  %v2214_v41 = vpop.f32.mrb[42].mxu1 }
 0x518   : > { %v3093_v42 = vpop.f32.mrb[43].mxu1 }
 0x519   : > { %v2231_v43 = vadd.f32 %v2825_v38, %v2223_v40  ;;  %v2841_v40 = vld [vmem:[%s821_s23] ss:$0 sm:$0xff] }
 0x51a   : > { %v2842_v42 = vld [vmem:[%s824_s11] ss:$0 sm:$0xff] }
 0x51b   : > { %v2232_v44 = vadd.f32 %v2231_v43, %v3613_v6  ;;  %v3221_v6 = vld [vmem:[%s3585_s20] sm:$0xff]  }
 0x51c   : > { %3103 = vmatpush3.bf16.msra.mxu1 %v3221_v6 }
 0x51d   : > { %v2235_v45 = vsel %vm891_vm2, %v2232_v44, 0.0  ;;  %3104 = vmatprep.subr.bf16.mxu1 %v3347_v2 }
 0x51e   : > { %2236 = vadd.xlane.f32.xlu0 %v2235_v45 }
 0x520   : > { %3105 = vmatpush3.bf16.msra.mxu1 %v3222_v62 }
 0x521   : > { %3106 = vmatprep.subr.bf16.mxu1 %v3347_v2 }
 0x524   : > { %3107 = vmatpush3.bf16.msra.mxu1 %v3223_v63 }
 0x525   : > { %3108 = vmatprep.subr.bf16.mxu1 %v3347_v2 }
 0x528   : > { %3109 = vmatpush3.bf16.msra.mxu1 %v3224_v0 }
 0x529   : > { %3110 = vmatprep.subr.bf16.mxu1 %v3347_v2 }
 0x52c   : > { %3111 = vmatpush3.bf16.msra.mxu1 %v3225_v1 }
 0x52d   : > { %3112 = vmatprep.subr.bf16.mxu1 %v3347_v2 }
 0x530   : > { %3113 = vmatpush3.bf16.msra.mxu1 %v3226_v3 }
 0x531   : > { %3114 = vmatprep.subr.bf16.mxu1 %v3347_v2 }
 0x534   : > { %3115 = vmatpush3.bf16.msra.mxu1 %v3227_v4 }
 0x535   : > { %3116 = vmatprep.subr.bf16.mxu1 %v3347_v2 }
 0x538   : > { %3117 = vmatpush3.bf16.msra.mxu1 %v3228_v5 }
 0x5ab   : > { %v2237_v34 = vpop.xlane.xlu0 %2236 }
 0x5ac   : > { %v2239_v46 = vmul.f32 0.03125, %v2237_v34 }
 0x5ae   : > { %v2240_v47 = vsub.f32 %v2232_v44, %v2239_v46 }
 0x5b0   : > { %v2241_v48 = vmul.f32 %v2240_v47, %v2240_v47 }
 0x5b2   : > { %v2242_v49 = vsel %vm891_vm2, %v2241_v48, 0.0 }
 0x5b3   : > { %2243 = vadd.xlane.f32.xlu1 %v2242_v49 }
 0x640   : > { %v2244_v52 = vpop.xlane.xlu1 %2243 }
 0x641   : > { %v2245_v53 = vmul.f32 0.03125, %v2244_v52 }
 0x643   : > { %v2246_v54 = vadd.f32 1e-05, %v2245_v53 }
 0x645   : > { %3245 = vrsqrt.f32 %v2246_v54 }
 0x64f   : > { %v3246_v55 = vpop.eup %3245 }
 0x650   : > { %v2248_v57 = vmul.f32 %v3246_v55, %v2240_v47 }
 0x652   : > { %v2255_v59 = vmul.f32 %v2826_v56, %v2248_v57 }
 0x654   : > { %v2262_v60 = vadd.f32 %v2827_v58, %v2255_v59 }
 0x656   : > { %v2263_v61 = vpack.c.bf16 %v2262_v60, %v2262_v60 }
 0x658   : > { %3099 = vmatmul.mubr.msk.bf16.vlgmr.msra.gmra.mrb[52].mxu0 %vm891_vm2, %v2263_v61 }
 0x72b   : > { %v2324_v8 = vpop.f32.mrb[52].mxu0 }
 0x72c   : > { %v2325_v9 = vadd.f32 %v2828_v7, %v2324_v8  ;;  %v3100_v10 = vpop.f32.mrb[53].mxu0 }
 0x72d   : > { %v2327_v11 = vpop.f32.mrb[54].mxu0 }
 0x72e   : > { %v2331_v12 = vmul.f32 0.044715, %v2325_v9  ;;  %v3101_v13 = vpop.f32.mrb[55].mxu0  ;;  %v2330_v2 = vmul.f32 0.5, %v2325_v9 }
 0x730   : > { %v2332_v14 = vmul.f32 %v2331_v12, %v2325_v9 }
 0x732   : > { %v2333_v15 = vmul.f32 %v2332_v14, %v2325_v9 }
 0x734   : > { %v2334_v16 = vadd.f32 %v2333_v15, %v2325_v9 }
 0x736   : > { %v2335_v17 = vmul.f32 0.7978846, %v2334_v16 }
 0x738   : > { %3247 = vtanh.f32 %v2335_v17 }
 0x742   : > { %v3248_v18 = vpop.eup %3247 }
 0x743   : > { %v2337_v19 = vadd.f32 1.0, %v3248_v18 }
 0x745   : > { %v2338_v20 = vmul.f32 %v2337_v19, %v2330_v2 }
 0x747   : > { %v2339_v21 = vpack.c.bf16 %v2338_v20, %v2338_v20 }
 0x749   : > { %3119 = vmatmul.mubr.bf16.vlgmr.msra.gmra.mrb[44].mxu1 %v2339_v21 }
 0x81c   : > { %v2445_v23 = vpop.f32.mrb[44].mxu1 }
 0x81d   : > { %v2446_v24 = vadd.f32 %v2832_v22, %v2445_v23  ;;  %v3120_v25 = vpop.f32.mrb[45].mxu1 }
 0x81e   : > { %v2448_v26 = vpop.f32.mrb[46].mxu1 }
 0x81f   : > { %v3121_v27 = vpop.f32.mrb[47].mxu1  ;;  %v2451_v29 = vadd.f32 %v2446_v24, %v2262_v60 }
 0x821   : > { %v2454_v30 = vsel %vm891_vm2, %v2451_v29, 0.0 }
 0x822   : > { %2455 = vadd.xlane.f32.xlu0 %v2454_v30 }
 0x8af   : > { %v2456_v31 = vpop.xlane.xlu0 %2455 }
 0x8b0   : > { %v2457_v28 = vmul.f32 0.03125, %v2456_v31 }
 0x8b2   : > { %v2458_v32 = vsub.f32 %v2451_v29, %v2457_v28 }
 0x8b4   : > { %v2459_v33 = vmul.f32 %v2458_v32, %v2458_v32 }
 0x8b6   : > { %v2460_v35 = vsel %vm891_vm2, %v2459_v33, 0.0 }
 0x8b7   : > { %2461 = vadd.xlane.f32.xlu1 %v2460_v35 }
 0x944   : > { %v2462_v36 = vpop.xlane.xlu1 %2461 }
 0x945   : > { %v2463_v37 = vmul.f32 0.03125, %v2462_v36 }
 0x947   : > { %v2464_v38 = vadd.f32 1e-05, %v2463_v37 }
 0x949   : > { %3249 = vrsqrt.f32 %v2464_v38 }
 0x953   : > { %v3250_v39 = vpop.eup %3249 }
 0x954   : > { %v2466_v41 = vmul.f32 %v3250_v39, %v2458_v32  ;;  %2485 = sbr.rel (%p2843_p1) target bundleno = 2395 (0x95b), region = 96 }
 0x956   : > { %v2473_v43 = vmul.f32 %v2841_v40, %v2466_v41 }
 0x958   : > { %v2480_v44 = vadd.f32 %v2842_v42, %v2473_v43 }
 0x95a   : > { %2481 = vst.msk [vmem:[#allocation2] sm:$0xff] %vm891_vm2, %v2480_v44  ;;  %2486 = vst.msk [vmem:[%s757_s10] sm:$0xff] (!%p2843_p1), %vm891_vm2, %v2480_v44 }
 0x95b PF: > { %s4015_s2 = sld [smem:[#allocation10_spill]]  ;;  %s4016_s23 = sld [smem:[#allocation7_spill]] }
 0x95c   : > { %s4018_s11 = sld [smem:[#allocation35_spill]]  ;;  %s2501_s4 = sshll.u32 %s757_s10, 4  ;;  %s2502_s4 = int_to_ptr.vmem [resolvable:$true] %s2501_s4 }
 0x95d   : > { %s3251_s5 = scalar_lea.vmem %s2502_s4, 128  ;;  %s3349_s19 = smov [#allocation3]  }
 0x95e   : > { %p3252_p2 = scmp.ne.s32.totalorder %s2502_s4, %s3251_s5  ;;  %s3255_s25 = sshll.u32 %s3349_s19, 4  ;;  %s3256_s25 = int_to_ptr.vmem [resolvable:$false] %s3255_s25 }
 0x95f   : > { %s3257_s16 = scalar_lea.vmem %s3256_s25, 256  ;;  %p3258_p6 = scmp.lt.s32.totalorder %s2502_s4, %s3256_s25 }
 0x960   : > { %p3253_p4 = pnand %p3252_p2, %p3489_p3  ;;  %p3259_p7 = scmp.lt.s32.totalorder %s3257_s16, %s3251_s5 }
 0x961   : > { %s2845_s27 = sshll.u32 %s4015_s2, 7  ;;  %s4019_s6 = sand.u32 1, %s4016_s23  }
 0x962   : > { %s3871_s0 = scalar_lea.hbm %s4018_s11, %s2845_s27  ;;  %s2488_s30 = scalar_lea.sflag [#allocation4], %s4019_s6 }
 0x963   : > { %p3254_p5 = pneg %p3253_p4  ;;  %p3260_p8 = por %p3259_p7, %p3258_p6 }
 0x965   : > { %p3261_p10 = pnand %p3260_p8, %p3254_p5 }
 0x967   : > { %3264 = shalt.err (!%p3261_p10)
}
 0x968   : > { %s3265_s10 = scalar_lea.hbm %s3871_s0, 128  ;;  %s3269_s7 = scalar_lea.hbm %s4018_s11, 256 }
 0x969   : > { %p3266_p11 = scmp.ne.s32.totalorder %s3871_s0, %s3265_s10  ;;  %p3270_p0 = scmp.lt.u32.totalorder %s3871_s0, %s4018_s11 }
 0x96a   : > { %p3271_p1 = scmp.lt.u32.totalorder %s3269_s7, %s3265_s10  ;;  %p3273_p4 = scmp.lt.u32.totalorder %s3265_s10, %s3871_s0 }
 0x96b   : > { %p3267_p12 = pnand %p3266_p11, %p3489_p3 }
 0x96c   : > { %p3272_p2 = por %p3271_p1, %p3270_p0 }
 0x96d   : > { %p3268_p13 = pneg %p3267_p12 }
 0x96e   : > { %p3274_p5 = por %p3273_p4, %p3272_p2 }
 0x970   : > { %p3275_p6 = pnand %p3274_p5, %p3268_p13 }
 0x972   : > { %3278 = shalt.err (!%p3275_p6)
}
 0x973   : > { %3122 = dma.vmem_to_hbm [thread:$0]  (%p3489_p3), %s2502_s4, 128, %s3871_s0, %s2488_s30  }
 0x974 PF: > { %s4020_s15 = sld [smem:[#allocation13_spill]]  ;;  %s4021_s3 = sld [smem:[#allocation6_spill]] }
 0x97a   : > { %p3128_p7 = scmp.ge.s32.totalorder %s4020_s15, 2  ;;  %s2513_s1 = sand.u32 1, %s4021_s3  }
 0x97b   : > { %s2514_s21 = scalar_lea.sflag [#allocation4], %s2513_s1 }
 0x97c   : > { %p3125_p8 = pnand %p3128_p7, %p3499_p9 }
 0x97e   : > { %3312 = dma.done.wait (!%p3125_p8), %s2514_s21, 128  }
 0x97f   : > { %3314 = vsyncadd (!%p3125_p8), %s2514_s21, 4294967168  ;;  %s30_s30 = sadd.s32 1, %s4020_s15   ;;  %s4023_s24 = sld [smem:[#allocation7_spill]] }
 0x980   : > { %p27_p10 = scmp.ge.s32.totalorder %s30_s30, 6   ;;  %s4024_s25 = sld [smem:[#allocation8_spill]] }
 0x981   : > { %s4025_s26 = sld [smem:[#allocation18_spill]]  ;;  %s4026_s27 = sld [smem:[#allocation11_spill]] }
 0x982   : > { %s4027_s28 = sld [smem:[#allocation12_spill]]  ;;  %s4028_s29 = sld [smem:[#allocation14_spill]] }
 0x983   : > { %s4029_s0 = sld [smem:[#allocation16_spill]]  ;;  %29 = sbr.rel (!%p27_p10) target bundleno = 19 (0x13), region = 179 }
 0x98a   :  { %2519 = vsyncpa [#allocation4], 1 }
 0x98b   :  { %2521 = vsyncpa [#allocation4 + $0x1], 1 }

</bundles_post_ra>
